<compile_context>
chip_gen: v6e
topology: v6e:2x2x1
jax: 0.10.0
libtpu: 0.0.40
codegen_flags: <defaults>
</compile_context>

<pallas_src>
import jax
import jax.numpy as jnp
import numpy as np
from jax.experimental import pallas as pl
from jax.experimental.pallas import tpu as pltpu

_EPS = 1e-6
_INV_SQRT2 = 0.7071067811865476


def _gelu_exact(x):
    # nn.GELU() default (exact erf form).
    return 0.5 * x * (1.0 + jax.lax.erf(x * _INV_SQRT2))


def _layernorm(x, g, b):
    mu = jnp.mean(x, axis=-1, keepdims=True)
    xc = x - mu
    var = jnp.mean(xc * xc, axis=-1, keepdims=True)
    return xc * jax.lax.rsqrt(var + _EPS) * g + b


def _make_kernel(q, fh, fw, C):
    n_tok = fh * fw
    T = q * n_tok  # tokens per grid step

    def kernel(x_ref, ln_g, ln_b, wiu, biu, wiv, biv,
               ln2_g, ln2_b, wdb, bd_nc, wot, bo, o_ref):
        # x_ref : (1, q*fh, fw, C) -- q vertically adjacent spatial blocks.
        # Leading-dim merge only -> free reshape; each patch's n_tok tokens are contiguous rows.
        x = x_ref[...].reshape(T, C)
        xf = x.astype(jnp.float32)

        # ---- LayerNorm over channels --------------------------------------
        y = _layernorm(xf, ln_g[...], ln_b[...])
        yb = y.astype(jnp.bfloat16)

        # ---- in_project (split into u/v halves; bf16 MXU, f32 accumulate) --
        u = jnp.dot(yb, wiu[...], preferred_element_type=jnp.float32) + biu[...]
        v = jnp.dot(yb, wiv[...], preferred_element_type=jnp.float32) + biv[...]
        u = _gelu_exact(u)                                   # (T, C)
        v = _gelu_exact(v)                                   # (T, C)

        # ---- BlockGatingUnit ------------------------------------------------
        v = _layernorm(v, ln2_g[...], ln2_b[...])
        v3 = v.astype(jnp.bfloat16).reshape(q, n_tok, C)     # free leading-dim split
        # Token mixing per patch: out[p,i,c] = sum_j Wd[i,j] * v[p,j,c]
        # (batched dot over the patch axis, contraction on the token axis).
        vm = jax.lax.dot_general(
            wdb[...], v3,
            dimension_numbers=(((2,), (1,)), ((0,), (0,))),
            preferred_element_type=jnp.float32)              # (q, n_tok, C)
        vm = vm + bd_nc[...][None, :, :]                     # pre-broadcast bias, plain VPU add
        gate = u * (vm.reshape(T, C) + 1.0)

        # ---- out_project + residual (dropout rate 0 == identity) ------------
        yo = jnp.dot(gate.astype(jnp.bfloat16), wot[...],
                     preferred_element_type=jnp.float32) + bo[...]
        out = xf + yo
        o_ref[...] = out.reshape(1, q * fh, fw, C).astype(o_ref.dtype)

    return kernel


def block_gmlp_forward(x, params, block_size, *, max_tokens_per_step=512):
    """BlockGmlpLayer.forward: x (N, H, W, C) -> (N, H, W, C)."""
    fh, fw = block_size
    N, H, W, C = x.shape
    assert H % fh == 0 and W % fw == 0
    gh, gw = H // fh, W // fw
    n_tok = fh * fw

    # Batch q block-rows of patches per grid step (q | gh).  ~512 tokens/step keeps the MXU fed
    # and the per-step overhead amortized while the VMEM footprint stays tiny on every TPU gen.
    q = max(1, min(gh, max_tokens_per_step // n_tok))
    while gh % q != 0:
        q -= 1
    T = q * n_tok

    f32, bf16 = jnp.float32, jnp.bfloat16

    # One-time (tiny) parameter reshapes / casts in the wrapper.
    ln_g = params["ln_gamma"].reshape(1, C).astype(f32)
    ln_b = params["ln_beta"].reshape(1, C).astype(f32)
    wi = params["wi"]                                  # (2C, C) torch Linear layout
    wiu = wi[:C].T.astype(bf16)                        # (C, C)  -> u half
    wiv = wi[C:].T.astype(bf16)                        # (C, C)  -> v half
    biu = params["bi"][:C].reshape(1, C).astype(f32)
    biv = params["bi"][C:].reshape(1, C).astype(f32)
    ln2_g = params["ln2_gamma"].reshape(1, C).astype(f32)
    ln2_b = params["ln2_beta"].reshape(1, C).astype(f32)
    wdb = jnp.tile(params["wd"].astype(bf16)[None], (q, 1, 1))            # (q, n, n)
    bd_nc = jnp.tile(params["bd"].reshape(n_tok, 1).astype(f32), (1, C))  # (n, C)
    wot = params["wo"].T.astype(bf16)                  # (C, C)
    bo = params["bo"].reshape(1, C).astype(f32)

    kernel = _make_kernel(q, fh, fw, C)

    def const_spec(shape):
        nd = len(shape)
        return pl.BlockSpec(shape, lambda b, i, j, _nd=nd: (0,) * _nd)

    x_spec = pl.BlockSpec((1, q * fh, fw, C), lambda b, i, j: (b, i, j, 0))
    o_spec = pl.BlockSpec((1, q * fh, fw, C), lambda b, i, j: (b, i, j, 0))

    weights = (ln_g, ln_b, wiu, biu, wiv, biv, ln2_g, ln2_b, wdb, bd_nc, wot, bo)
    param_bytes = sum(int(np.prod(w.shape)) * w.dtype.itemsize for w in weights)
    tokens_total = N * H * W
    macs_per_tok = C * (2 * C) + n_tok * C + C * C
    cost = pl.CostEstimate(
        flops=int(2 * tokens_total * macs_per_tok),
        transcendentals=int(tokens_total * 2 * C),
        bytes_accessed=int(2 * tokens_total * C * x.dtype.itemsize + param_bytes))

    return pl.pallas_call(
        kernel,
        out_shape=jax.ShapeDtypeStruct((N, H, W, C), x.dtype),
        grid_spec=pltpu.PrefetchScalarGridSpec(
            num_scalar_prefetch=0,
            grid=(N, gh // q, gw),
            in_specs=[
                x_spec,
                const_spec((1, C)), const_spec((1, C)),            # LayerNorm gamma/beta
                const_spec((C, C)), const_spec((1, C)),            # in_project (u half)
                const_spec((C, C)), const_spec((1, C)),            # in_project (v half)
                const_spec((1, C)), const_spec((1, C)),            # intermediate LN gamma/beta
                const_spec((q, n_tok, n_tok)), const_spec((n_tok, C)),  # Dense_0 (token mixing)
                const_spec((C, C)), const_spec((1, C)),            # out_project
            ],
            out_specs=o_spec,
        ),
        compiler_params=pltpu.CompilerParams(
            dimension_semantics=("parallel", "parallel", "parallel")),
        cost_estimate=cost,
    )(x, ln_g, ln_b, wiu, biu, wiv, biv, ln2_g, ln2_b, wdb, bd_nc, wot, bo)


def _reference(x, params, block_size):
    """Pure-JAX (full f32) mirror of the PyTorch BlockGmlpLayer.forward."""
    fh, fw = block_size
    N, H, W, C = x.shape
    gh, gw = H // fh, W // fw
    hi = jax.lax.Precision.HIGHEST

    def ln(t, g, b):
        m = jnp.mean(t, axis=-1, keepdims=True)
        v = jnp.mean(jnp.square(t - m), axis=-1, keepdims=True)
        return (t - m) / jnp.sqrt(v + _EPS) * g + b

    # block_images_einops
    xb = x.reshape(N, gh, fh, gw, fw, C)
    xb = jnp.transpose(xb, (0, 1, 3, 2, 4, 5)).reshape(N, gh * gw, fh * fw, C)

    y = ln(xb, params["ln_gamma"], params["ln_beta"])
    y = jnp.matmul(y, params["wi"].T, precision=hi) + params["bi"]
    y = _gelu_exact(y)

    c = y.shape[-1] // 2
    u, v = y[..., :c], y[..., c:]
    v = ln(v, params["ln2_gamma"], params["ln2_beta"])
    v = jnp.swapaxes(v, -1, -2)                              # (N, G, C, n)
    v = jnp.matmul(v, params["wd"].T, precision=hi) + params["bd"]
    v = jnp.swapaxes(v, -1, -2)                              # (N, G, n, C)
    y = u * (v + 1.0)
    y = jnp.matmul(y, params["wo"].T, precision=hi) + params["bo"]
    xb = xb + y                                              # dropout(rate=0) is identity

    # unblock_images_einops
    out = xb.reshape(N, gh, gw, fh, fw, C)
    out = jnp.transpose(out, (0, 1, 3, 2, 4, 5)).reshape(N, H, W, C)
    return out


if __name__ == "__main__":
    # Small shapes consistent with the module: block_size=(8,8), num_channels=32, factor=2.
    N, H, W, C = 2, 16, 16, 32
    fh, fw = 8, 8
    n_tok = fh * fw
    factor = 2

    key = jax.random.PRNGKey(0)
    keys = jax.random.split(key, 12)
    x = jax.random.normal(keys[0], (N, H, W, C), dtype=jnp.float32)

    params = {
        "ln_gamma": 1.0 + 0.1 * jax.random.normal(keys[1], (C,), jnp.float32),
        "ln_beta": 0.1 * jax.random.normal(keys[2], (C,), jnp.float32),
        "wi": 0.1 * jax.random.normal(keys[3], (C * factor, C), jnp.float32),
        "bi": 0.1 * jax.random.normal(keys[4], (C * factor,), jnp.float32),
        "ln2_gamma": 1.0 + 0.1 * jax.random.normal(keys[5], (C,), jnp.float32),
        "ln2_beta": 0.1 * jax.random.normal(keys[6], (C,), jnp.float32),
        "wd": 0.1 * jax.random.normal(keys[7], (n_tok, n_tok), jnp.float32),
        "bd": 0.1 * jax.random.normal(keys[8], (n_tok,), jnp.float32),
        "wo": 0.1 * jax.random.normal(keys[9], (C, C), jnp.float32),
        "bo": 0.1 * jax.random.normal(keys[10], (C,), jnp.float32),
    }

    out = block_gmlp_forward(x, params, (fh, fw))
    out = jax.block_until_ready(out)

    ref = jax.block_until_ready(_reference(x, params, (fh, fw)))
    # The kernel feeds the MXU bf16 inputs (with f32 accumulation) per the perf review, so it is
    # compared against the exact-f32 reference with correspondingly loosened tolerances; real
    # functional bugs would produce O(0.1..1) errors, far above this band.
    np.testing.assert_allclose(np.asarray(out), np.asarray(ref), rtol=5e-2, atol=5e-2)
    assert out.shape == (N, H, W, C)
    print("KERNEL_OK")
</pallas_src>

<mosaic_0001>
module attributes {stable_mosaic.version = 11 : i64} {
  func.func @kernel(%arg0: i32, %arg1: i32, %arg2: i32, %arg3: memref<1x16x8x32xf32, #tpu.memory_space<vmem>>, %arg4: memref<1x32xf32, #tpu.memory_space<vmem>>, %arg5: memref<1x32xf32, #tpu.memory_space<vmem>>, %arg6: memref<32x32xbf16, #tpu.memory_space<vmem>>, %arg7: memref<1x32xf32, #tpu.memory_space<vmem>>, %arg8: memref<32x32xbf16, #tpu.memory_space<vmem>>, %arg9: memref<1x32xf32, #tpu.memory_space<vmem>>, %arg10: memref<1x32xf32, #tpu.memory_space<vmem>>, %arg11: memref<1x32xf32, #tpu.memory_space<vmem>>, %arg12: memref<2x64x64xbf16, #tpu.memory_space<vmem>>, %arg13: memref<64x32xf32, #tpu.memory_space<vmem>>, %arg14: memref<32x32xbf16, #tpu.memory_space<vmem>>, %arg15: memref<1x32xf32, #tpu.memory_space<vmem>>, %arg16: memref<1x16x8x32xf32, #tpu.memory_space<vmem>>) attributes {dimension_semantics = [#tpu.dimension_semantics<parallel>, #tpu.dimension_semantics<parallel>, #tpu.dimension_semantics<parallel>], iteration_bounds = array<i64: 2, 1, 2>, scalar_prefetch = 0 : i64, scratch_operands = 0 : i64, tpu.core_type = #tpu.core_type<tc>, window_params = [{transform_indices = @transform_0, window_bounds = array<i64: 1, 16, 8, 32>}, {pipeline_mode = #tpu.pipeline_mode<synchronous>, transform_indices = @transform_1, window_bounds = array<i64: 1, 32>}, {pipeline_mode = #tpu.pipeline_mode<synchronous>, transform_indices = @transform_2, window_bounds = array<i64: 1, 32>}, {pipeline_mode = #tpu.pipeline_mode<synchronous>, transform_indices = @transform_3, window_bounds = array<i64: 32, 32>}, {pipeline_mode = #tpu.pipeline_mode<synchronous>, transform_indices = @transform_4, window_bounds = array<i64: 1, 32>}, {pipeline_mode = #tpu.pipeline_mode<synchronous>, transform_indices = @transform_5, window_bounds = array<i64: 32, 32>}, {pipeline_mode = #tpu.pipeline_mode<synchronous>, transform_indices = @transform_6, window_bounds = array<i64: 1, 32>}, {pipeline_mode = #tpu.pipeline_mode<synchronous>, transform_indices = @transform_7, window_bounds = array<i64: 1, 32>}, {pipeline_mode = #tpu.pipeline_mode<synchronous>, transform_indices = @transform_8, window_bounds = array<i64: 1, 32>}, {pipeline_mode = #tpu.pipeline_mode<synchronous>, transform_indices = @transform_9, window_bounds = array<i64: 2, 64, 64>}, {pipeline_mode = #tpu.pipeline_mode<synchronous>, transform_indices = @transform_10, window_bounds = array<i64: 64, 32>}, {pipeline_mode = #tpu.pipeline_mode<synchronous>, transform_indices = @transform_11, window_bounds = array<i64: 32, 32>}, {pipeline_mode = #tpu.pipeline_mode<synchronous>, transform_indices = @transform_12, window_bounds = array<i64: 1, 32>}, {transform_indices = @transform_13, window_bounds = array<i64: 1, 16, 8, 32>}]} {
    %c0 = arith.constant 0 : index
    %c0_0 = arith.constant 0 : index
    %c0_1 = arith.constant 0 : index
    %c0_2 = arith.constant 0 : index
    %0 = vector.load %arg3[%c0, %c0_0, %c0_1, %c0_2] : memref<1x16x8x32xf32, #tpu.memory_space<vmem>>, vector<1x16x8x32xf32>
    %1 = vector.shape_cast %0 : vector<1x16x8x32xf32> to vector<128x32xf32>
    %c0_3 = arith.constant 0 : index
    %c0_4 = arith.constant 0 : index
    %2 = vector.load %arg4[%c0_3, %c0_4] : memref<1x32xf32, #tpu.memory_space<vmem>>, vector<1x32xf32>
    %c0_5 = arith.constant 0 : index
    %c0_6 = arith.constant 0 : index
    %3 = vector.load %arg5[%c0_5, %c0_6] : memref<1x32xf32, #tpu.memory_space<vmem>>, vector<1x32xf32>
    %cst = arith.constant dense<0.000000e+00> : vector<128xf32>
    %4 = vector.multi_reduction <add>, %1, %cst [1] : vector<128x32xf32> to vector<128xf32>
    %5 = vector.shape_cast %4 : vector<128xf32> to vector<128x1xf32>
    %cst_7 = arith.constant 3.200000e+01 : f32
    %6 = vector.broadcast %cst_7 : f32 to vector<128x1xf32>
    %7 = arith.divf %5, %6 : vector<128x1xf32>
    %8 = vector.broadcast %7 : vector<128x1xf32> to vector<128x32xf32>
    %9 = arith.subf %1, %8 : vector<128x32xf32>
    %10 = arith.mulf %9, %9 : vector<128x32xf32>
    %cst_8 = arith.constant dense<0.000000e+00> : vector<128xf32>
    %11 = vector.multi_reduction <add>, %10, %cst_8 [1] : vector<128x32xf32> to vector<128xf32>
    %12 = vector.shape_cast %11 : vector<128xf32> to vector<128x1xf32>
    %cst_9 = arith.constant 3.200000e+01 : f32
    %13 = vector.broadcast %cst_9 : f32 to vector<128x1xf32>
    %14 = arith.divf %12, %13 : vector<128x1xf32>
    %cst_10 = arith.constant 9.99999997E-7 : f32
    %15 = vector.broadcast %cst_10 : f32 to vector<128x1xf32>
    %16 = arith.addf %14, %15 : vector<128x1xf32>
    %17 = math.rsqrt %16 : vector<128x1xf32>
    %18 = vector.broadcast %17 : vector<128x1xf32> to vector<128x32xf32>
    %19 = arith.mulf %9, %18 : vector<128x32xf32>
    %20 = vector.broadcast %2 : vector<1x32xf32> to vector<128x32xf32>
    %21 = arith.mulf %19, %20 : vector<128x32xf32>
    %22 = vector.broadcast %3 : vector<1x32xf32> to vector<128x32xf32>
    %23 = arith.addf %21, %22 : vector<128x32xf32>
    %24 = arith.truncf %23 : vector<128x32xf32> to vector<128x32xbf16>
    %c0_11 = arith.constant 0 : index
    %c0_12 = arith.constant 0 : index
    %25 = vector.load %arg6[%c0_11, %c0_12] : memref<32x32xbf16, #tpu.memory_space<vmem>>, vector<32x32xbf16>
    %cst_13 = arith.constant dense<0.000000e+00> : vector<128x32xf32>
    %26 = tpu.matmul %24, %25, %cst_13 {dimension_numbers = #tpu.dot_dimension_numbers<[1], [0], [0], [1], [0, 0, 1, 1], [], []>} : vector<128x32xbf16>, vector<32x32xbf16>, vector<128x32xf32> -> vector<128x32xf32>
    %c0_14 = arith.constant 0 : index
    %c0_15 = arith.constant 0 : index
    %27 = vector.load %arg7[%c0_14, %c0_15] : memref<1x32xf32, #tpu.memory_space<vmem>>, vector<1x32xf32>
    %28 = vector.broadcast %27 : vector<1x32xf32> to vector<128x32xf32>
    %29 = arith.addf %26, %28 : vector<128x32xf32>
    %c0_16 = arith.constant 0 : index
    %c0_17 = arith.constant 0 : index
    %30 = vector.load %arg8[%c0_16, %c0_17] : memref<32x32xbf16, #tpu.memory_space<vmem>>, vector<32x32xbf16>
    %cst_18 = arith.constant dense<0.000000e+00> : vector<128x32xf32>
    %31 = tpu.matmul %24, %30, %cst_18 {dimension_numbers = #tpu.dot_dimension_numbers<[1], [0], [0], [1], [0, 0, 1, 1], [], []>} : vector<128x32xbf16>, vector<32x32xbf16>, vector<128x32xf32> -> vector<128x32xf32>
    %c0_19 = arith.constant 0 : index
    %c0_20 = arith.constant 0 : index
    %32 = vector.load %arg9[%c0_19, %c0_20] : memref<1x32xf32, #tpu.memory_space<vmem>>, vector<1x32xf32>
    %33 = vector.broadcast %32 : vector<1x32xf32> to vector<128x32xf32>
    %34 = arith.addf %31, %33 : vector<128x32xf32>
    %cst_21 = arith.constant 5.000000e-01 : f32
    %35 = vector.broadcast %cst_21 : f32 to vector<128x32xf32>
    %36 = arith.mulf %35, %29 : vector<128x32xf32>
    %cst_22 = arith.constant 0.707106769 : f32
    %37 = vector.broadcast %cst_22 : f32 to vector<128x32xf32>
    %38 = arith.mulf %29, %37 : vector<128x32xf32>
    %39 = math.erf %38 : vector<128x32xf32>
    %cst_23 = arith.constant 1.000000e+00 : f32
    %40 = vector.broadcast %cst_23 : f32 to vector<128x32xf32>
    %41 = arith.addf %40, %39 : vector<128x32xf32>
    %42 = arith.mulf %36, %41 : vector<128x32xf32>
    %cst_24 = arith.constant 5.000000e-01 : f32
    %43 = vector.broadcast %cst_24 : f32 to vector<128x32xf32>
    %44 = arith.mulf %43, %34 : vector<128x32xf32>
    %cst_25 = arith.constant 0.707106769 : f32
    %45 = vector.broadcast %cst_25 : f32 to vector<128x32xf32>
    %46 = arith.mulf %34, %45 : vector<128x32xf32>
    %47 = math.erf %46 : vector<128x32xf32>
    %cst_26 = arith.constant 1.000000e+00 : f32
    %48 = vector.broadcast %cst_26 : f32 to vector<128x32xf32>
    %49 = arith.addf %48, %47 : vector<128x32xf32>
    %50 = arith.mulf %44, %49 : vector<128x32xf32>
    %c0_27 = arith.constant 0 : index
    %c0_28 = arith.constant 0 : index
    %51 = vector.load %arg10[%c0_27, %c0_28] : memref<1x32xf32, #tpu.memory_space<vmem>>, vector<1x32xf32>
    %c0_29 = arith.constant 0 : index
    %c0_30 = arith.constant 0 : index
    %52 = vector.load %arg11[%c0_29, %c0_30] : memref<1x32xf32, #tpu.memory_space<vmem>>, vector<1x32xf32>
    %cst_31 = arith.constant dense<0.000000e+00> : vector<128xf32>
    %53 = vector.multi_reduction <add>, %50, %cst_31 [1] : vector<128x32xf32> to vector<128xf32>
    %54 = vector.shape_cast %53 : vector<128xf32> to vector<128x1xf32>
    %cst_32 = arith.constant 3.200000e+01 : f32
    %55 = vector.broadcast %cst_32 : f32 to vector<128x1xf32>
    %56 = arith.divf %54, %55 : vector<128x1xf32>
    %57 = vector.broadcast %56 : vector<128x1xf32> to vector<128x32xf32>
    %58 = arith.subf %50, %57 : vector<128x32xf32>
    %59 = arith.mulf %58, %58 : vector<128x32xf32>
    %cst_33 = arith.constant dense<0.000000e+00> : vector<128xf32>
    %60 = vector.multi_reduction <add>, %59, %cst_33 [1] : vector<128x32xf32> to vector<128xf32>
    %61 = vector.shape_cast %60 : vector<128xf32> to vector<128x1xf32>
    %cst_34 = arith.constant 3.200000e+01 : f32
    %62 = vector.broadcast %cst_34 : f32 to vector<128x1xf32>
    %63 = arith.divf %61, %62 : vector<128x1xf32>
    %cst_35 = arith.constant 9.99999997E-7 : f32
    %64 = vector.broadcast %cst_35 : f32 to vector<128x1xf32>
    %65 = arith.addf %63, %64 : vector<128x1xf32>
    %66 = math.rsqrt %65 : vector<128x1xf32>
    %67 = vector.broadcast %66 : vector<128x1xf32> to vector<128x32xf32>
    %68 = arith.mulf %58, %67 : vector<128x32xf32>
    %69 = vector.broadcast %51 : vector<1x32xf32> to vector<128x32xf32>
    %70 = arith.mulf %68, %69 : vector<128x32xf32>
    %71 = vector.broadcast %52 : vector<1x32xf32> to vector<128x32xf32>
    %72 = arith.addf %70, %71 : vector<128x32xf32>
    %73 = arith.truncf %72 : vector<128x32xf32> to vector<128x32xbf16>
    %74 = vector.shape_cast %73 : vector<128x32xbf16> to vector<2x64x32xbf16>
    %c0_36 = arith.constant 0 : index
    %c0_37 = arith.constant 0 : index
    %c0_38 = arith.constant 0 : index
    %75 = vector.load %arg12[%c0_36, %c0_37, %c0_38] : memref<2x64x64xbf16, #tpu.memory_space<vmem>>, vector<2x64x64xbf16>
    %cst_39 = arith.constant dense<0.000000e+00> : vector<2x64x32xf32>
    %76 = tpu.matmul %75, %74, %cst_39 {dimension_numbers = #tpu.dot_dimension_numbers<[2], [1], [1], [2], [0, 0, 0, 1, 1, 2], [0], [0]>} : vector<2x64x64xbf16>, vector<2x64x32xbf16>, vector<2x64x32xf32> -> vector<2x64x32xf32>
    %c0_40 = arith.constant 0 : index
    %c0_41 = arith.constant 0 : index
    %77 = vector.load %arg13[%c0_40, %c0_41] : memref<64x32xf32, #tpu.memory_space<vmem>>, vector<64x32xf32>
    %78 = vector.shape_cast %77 : vector<64x32xf32> to vector<1x64x32xf32>
    %79 = vector.broadcast %78 : vector<1x64x32xf32> to vector<2x64x32xf32>
    %80 = arith.addf %76, %79 : vector<2x64x32xf32>
    %81 = vector.shape_cast %80 : vector<2x64x32xf32> to vector<128x32xf32>
    %cst_42 = arith.constant 1.000000e+00 : f32
    %82 = vector.broadcast %cst_42 : f32 to vector<128x32xf32>
    %83 = arith.addf %81, %82 : vector<128x32xf32>
    %84 = arith.mulf %42, %83 : vector<128x32xf32>
    %85 = arith.truncf %84 : vector<128x32xf32> to vector<128x32xbf16>
    %c0_43 = arith.constant 0 : index
    %c0_44 = arith.constant 0 : index
    %86 = vector.load %arg14[%c0_43, %c0_44] : memref<32x32xbf16, #tpu.memory_space<vmem>>, vector<32x32xbf16>
    %cst_45 = arith.constant dense<0.000000e+00> : vector<128x32xf32>
    %87 = tpu.matmul %85, %86, %cst_45 {dimension_numbers = #tpu.dot_dimension_numbers<[1], [0], [0], [1], [0, 0, 1, 1], [], []>} : vector<128x32xbf16>, vector<32x32xbf16>, vector<128x32xf32> -> vector<128x32xf32>
    %c0_46 = arith.constant 0 : index
    %c0_47 = arith.constant 0 : index
    %88 = vector.load %arg15[%c0_46, %c0_47] : memref<1x32xf32, #tpu.memory_space<vmem>>, vector<1x32xf32>
    %89 = vector.broadcast %88 : vector<1x32xf32> to vector<128x32xf32>
    %90 = arith.addf %87, %89 : vector<128x32xf32>
    %91 = arith.addf %1, %90 : vector<128x32xf32>
    %92 = vector.shape_cast %91 : vector<128x32xf32> to vector<1x16x8x32xf32>
    %c0_48 = arith.constant 0 : index
    %c0_49 = arith.constant 0 : index
    %c0_50 = arith.constant 0 : index
    %c0_51 = arith.constant 0 : index
    %93 = vector.load %arg16[%c0_48, %c0_49, %c0_50, %c0_51] : memref<1x16x8x32xf32, #tpu.memory_space<vmem>>, vector<1x16x8x32xf32>
    tpu.vector_store %arg16[%c0_48, %c0_49, %c0_50, %c0_51], %92 {strides = array<i32>} : memref<1x16x8x32xf32, #tpu.memory_space<vmem>>, vector<1x16x8x32xf32>,
    return
  }
  func.func @transform_0(%arg0: i32, %arg1: i32, %arg2: i32) -> (i32, i32, i32, i32) {
    %c0_i32 = arith.constant 0 : i32
    %c0_i32_0 = arith.constant 0 : i32
    return %arg0, %arg1, %arg2, %c0_i32 : i32, i32, i32, i32
  }
  func.func @transform_1(%arg0: i32, %arg1: i32, %arg2: i32) -> (i32, i32) {
    %c0_i32 = arith.constant 0 : i32
    %c0_i32_0 = arith.constant 0 : i32
    %c0_i32_1 = arith.constant 0 : i32
    return %c0_i32, %c0_i32_0 : i32, i32
  }
  func.func @transform_2(%arg0: i32, %arg1: i32, %arg2: i32) -> (i32, i32) {
    %c0_i32 = arith.constant 0 : i32
    %c0_i32_0 = arith.constant 0 : i32
    %c0_i32_1 = arith.constant 0 : i32
    return %c0_i32, %c0_i32_0 : i32, i32
  }
  func.func @transform_3(%arg0: i32, %arg1: i32, %arg2: i32) -> (i32, i32) {
    %c0_i32 = arith.constant 0 : i32
    %c0_i32_0 = arith.constant 0 : i32
    %c0_i32_1 = arith.constant 0 : i32
    return %c0_i32, %c0_i32_0 : i32, i32
  }
  func.func @transform_4(%arg0: i32, %arg1: i32, %arg2: i32) -> (i32, i32) {
    %c0_i32 = arith.constant 0 : i32
    %c0_i32_0 = arith.constant 0 : i32
    %c0_i32_1 = arith.constant 0 : i32
    return %c0_i32, %c0_i32_0 : i32, i32
  }
  func.func @transform_5(%arg0: i32, %arg1: i32, %arg2: i32) -> (i32, i32) {
    %c0_i32 = arith.constant 0 : i32
    %c0_i32_0 = arith.constant 0 : i32
    %c0_i32_1 = arith.constant 0 : i32
    return %c0_i32, %c0_i32_0 : i32, i32
  }
  func.func @transform_6(%arg0: i32, %arg1: i32, %arg2: i32) -> (i32, i32) {
    %c0_i32 = arith.constant 0 : i32
    %c0_i32_0 = arith.constant 0 : i32
    %c0_i32_1 = arith.constant 0 : i32
    return %c0_i32, %c0_i32_0 : i32, i32
  }
  func.func @transform_7(%arg0: i32, %arg1: i32, %arg2: i32) -> (i32, i32) {
    %c0_i32 = arith.constant 0 : i32
    %c0_i32_0 = arith.constant 0 : i32
    %c0_i32_1 = arith.constant 0 : i32
    return %c0_i32, %c0_i32_0 : i32, i32
  }
  func.func @transform_8(%arg0: i32, %arg1: i32, %arg2: i32) -> (i32, i32) {
    %c0_i32 = arith.constant 0 : i32
    %c0_i32_0 = arith.constant 0 : i32
    %c0_i32_1 = arith.constant 0 : i32
    return %c0_i32, %c0_i32_0 : i32, i32
  }
  func.func @transform_9(%arg0: i32, %arg1: i32, %arg2: i32) -> (i32, i32, i32) {
    %c0_i32 = arith.constant 0 : i32
    %c0_i32_0 = arith.constant 0 : i32
    %c0_i32_1 = arith.constant 0 : i32
    %c0_i32_2 = arith.constant 0 : i32
    return %c0_i32, %c0_i32_0, %c0_i32_1 : i32, i32, i32
  }
  func.func @transform_10(%arg0: i32, %arg1: i32, %arg2: i32) -> (i32, i32) {
    %c0_i32 = arith.constant 0 : i32
    %c0_i32_0 = arith.constant 0 : i32
    %c0_i32_1 = arith.constant 0 : i32
    return %c0_i32, %c0_i32_0 : i32, i32
  }
  func.func @transform_11(%arg0: i32, %arg1: i32, %arg2: i32) -> (i32, i32) {
    %c0_i32 = arith.constant 0 : i32
    %c0_i32_0 = arith.constant 0 : i32
    %c0_i32_1 = arith.constant 0 : i32
    return %c0_i32, %c0_i32_0 : i32, i32
  }
  func.func @transform_12(%arg0: i32, %arg1: i32, %arg2: i32) -> (i32, i32) {
    %c0_i32 = arith.constant 0 : i32
    %c0_i32_0 = arith.constant 0 : i32
    %c0_i32_1 = arith.constant 0 : i32
    return %c0_i32, %c0_i32_0 : i32, i32
  }
  func.func @transform_13(%arg0: i32, %arg1: i32, %arg2: i32) -> (i32, i32, i32, i32) {
    %c0_i32 = arith.constant 0 : i32
    %c0_i32_0 = arith.constant 0 : i32
    return %arg0, %arg1, %arg2, %c0_i32 : i32, i32, i32, i32
  }
}

</mosaic_0001>

<bundles_post_ra>
// kernel: tpu_custom_call.1
= control target key start
LH: loop header
LB: loop body
LE: loop exit
PB: predicated region body
PF: predicated region fallthrough
CT: control target
= control target key end

     0   :  { %s4092_s0 = inlined_call_operand.hbm [shape: f32[2,16,16,32], index: 0, kind: input, shape index: {}]   ;;  %s4093_s1 = inlined_call_operand.hbm [shape: f32[1,32], index: 1, kind: input, shape index: {}]   ;;  %s4094_s2 = inlined_call_operand.hbm [shape: f32[1,32], index: 2, kind: input, shape index: {}]   ;;  %s4095_s3 = inlined_call_operand.vmem [shape: bf16[32,32], index: 3, kind: input, shape index: {}]   ;;  %s4096_s4 = inlined_call_operand.hbm [shape: f32[1,32], index: 4, kind: input, shape index: {}]   ;;  %s4097_s5 = inlined_call_operand.vmem [shape: bf16[32,32], index: 5, kind: input, shape index: {}]   ;;  %s4098_s6 = inlined_call_operand.hbm [shape: f32[1,32], index: 6, kind: input, shape index: {}]   ;;  %s4099_s7 = inlined_call_operand.hbm [shape: f32[1,32], index: 7, kind: input, shape index: {}]   ;;  %s4100_s8 = inlined_call_operand.hbm [shape: f32[1,32], index: 8, kind: input, shape index: {}]   ;;  %s4101_s9 = inlined_call_operand.vmem [shape: bf16[2,64,64], index: 9, kind: input, shape index: {}]   ;;  %s4102_s10 = inlined_call_operand.vmem [shape: f32[64,32], index: 10, kind: input, shape index: {}]   ;;  %s4103_s11 = inlined_call_operand.vmem [shape: bf16[32,32], index: 11, kind: input, shape index: {}]   ;;  %s4104_s12 = inlined_call_operand.vmem [shape: f32[1,32], index: 12, kind: input, shape index: {}]   ;;  %s4105_s13 = inlined_call_operand.hbm [shape: f32[2,16,16,32], index: 13, kind: output, shape index: {}]  }
   0x1   :  { %4116 = sst [smem:[#allocation26_spill]] %s4093_s1 }
   0x2   :  { %4117 = sst [smem:[#allocation27_spill]] %s4094_s2 }
   0x3   :  { %4118 = sst [smem:[#allocation28_spill]] %s4096_s4 }
   0x4   :  { %4119 = sst [smem:[#allocation29_spill]] %s4098_s6 }
   0x5   :  { %4120 = sst [smem:[#allocation30_spill]] %s4099_s7 }
   0x6   :  { %4121 = sst [smem:[#allocation31_spill]] %s4100_s8 }
   0x7   :  { %4122 = sst [smem:[#allocation32_spill]] %s4104_s12 }
   0x8   :  { %4123 = sst [smem:[#allocation33_spill]] %s4105_s13 }
   0x9   :  { %18 = vsyncpa [#allocation3], 0 }
   0xa   :  { %20 = vsyncpa [#allocation3 + $0x1], 0 }
   0xb   :  { %21 = vsyncpa [#allocation6], 0 }
   0xc   :  { %22 = vsyncpa [#allocation9], 0 }
   0xd   :  { %23 = vsyncpa [#allocation12], 0 }
   0xe   :  { %24 = vsyncpa [#allocation4], 0 }
   0xf   :  { %26 = vsyncpa [#allocation4 + $0x1], 0  ;;  %s3042_s25 = smov 0   ;;  %s3044_s26 = smov 0  }
  0x10   :  { %s3046_s27 = smov 0   ;;  %s3048_s28 = smov 0  }
  0x11   :  { %s3050_s29 = smov 0   ;;  %s3052_s30 = smov 0  }
  0x12   :  { %s3054_s14 = smov 0   ;;  %s3056_s15 = smov 0  }
  0x13 LB: > { %4124 = sst [smem:[#allocation20_spill]] %s2928_s25  ;;  %s4106_s16 = sadd.s32 4294967295, %s2956_s15   ;;  %s2956_s15 = sphi %s3056_s15, %s32_s15   ;;  %s2952_s14 = sphi %s3054_s14, %s4163_s14   ;;  %s2948_s30 = sphi %s3052_s30, %s4162_s30   ;;  %s2944_s29 = sphi %s3050_s29, %s4161_s29   ;;  %s2940_s28 = sphi %s3048_s28, %s4160_s28   ;;  %s2936_s27 = sphi %s3046_s27, %s4159_s27   ;;  %s2932_s26 = sphi %s3044_s26, %s4158_s26   ;;  %s2928_s25 = sphi %s3042_s25, %s4157_s25  }
  0x14   : > { %4125 = sst [smem:[#allocation21_spill]] %s2940_s28  ;;  %p2141_p0 = scmp.ge.s32.totalorder %s2956_s15, 1 }
  0x15   : > { %4126 = sst [smem:[#allocation22_spill]] %s2944_s29  ;;  %p3086_p1 = scmp.eq.s32.totalorder %s4106_s16, 0 }
  0x16   : > { %p368_p2 = scmp.lt.s32.totalorder %s2956_s15, 5  ;;  %s2958_s19 = smov [#allocation5]  }
  0x17   : > { %s4127_s17 = scalar_select %p3086_p1, 1, 0 }
  0x18   : > { %p3091_p3 = pnand %p2141_p0, %p368_p2  ;;  %s381_s20 = sshll.u32 %s2958_s19, 4  ;;  %s382_s20 = int_to_ptr.vmem [resolvable:$true] %s381_s20 }
  0x19   : > { %s2959_s21 = smov [#allocation8]   ;;  %s2960_s24 = smov [#allocation11]  }
  0x1a   : > { %s4128_s18 = scalar_select %p3091_p3, 1, 0 }
  0x1b   : > { %p2389_p4 = pneg %p3091_p3  ;;  %s406_s22 = sshll.u32 %s2959_s21, 4  ;;  %s407_s22 = int_to_ptr.vmem [resolvable:$true] %s406_s22 }
  0x1c   : > { %s431_s16 = sshll.u32 %s2960_s24, 4  ;;  %s2675_s19 = scalar_lea.vmem %s382_s20, 16  ;;  %s3103_s16 = int_to_ptr.vmem [resolvable:$true] %s431_s16 }
  0x1d   : > { %p3099_p5 = pnand %p2389_p4, %p3086_p1  ;;  %p2676_p7 = scmp.ne.s32.totalorder %s382_s20, %s2675_s19 }
  0x1e   : > { %s2682_s21 = scalar_lea.vmem %s382_s20, 32  ;;  %p2683_p10 = scmp.lt.s32.totalorder %s382_s20, %s382_s20 }
  0x1f   : > { %p3107_p6 = pneg %p3099_p5  ;;  %p2684_p11 = scmp.lt.s32.totalorder %s2682_s21, %s2675_s19 }
  0x21   : > { %p2678_p8 = pnand %p2676_p7, %p3107_p6  ;;  %p2685_p12 = por %p2684_p11, %p2683_p10 }
  0x23   : > { %p2679_p9 = pneg %p2678_p8 }
  0x25   : > { %p2686_p13 = pnand %p2685_p12, %p2679_p9 }
  0x27   : > { %2689 = shalt.err (!%p2686_p13)
}
  0x28   : > { %s4131_s1 = sld [smem:[#allocation26_spill]]  ;;  %s2701_s29 = scalar_lea.vmem %s407_s22, 16 }
  0x29   : > { %p2702_p0 = scmp.ne.s32.totalorder %s407_s22, %s2701_s29  ;;  %s2708_s12 = scalar_lea.vmem %s407_s22, 32 }
  0x2a   : > { %p2709_p7 = scmp.lt.s32.totalorder %s407_s22, %s407_s22  ;;  %p2710_p8 = scmp.lt.s32.totalorder %s2708_s12, %s2701_s29 }
  0x2b   : > { %p2704_p2 = pnand %p2702_p0, %p3107_p6 }
  0x2c   : > { %p2711_p3 = por %p2710_p8, %p2709_p7 }
  0x2d   : > { %p2705_p4 = pneg %p2704_p2 }
  0x2e   : > { %2392 = dma.hbm_to_vmem [thread:$0]  (!%p3099_p5), %s4131_s1, 16, %s382_s20, [#allocation6]  }
  0x2f   : > { %p2712_p1 = pnand %p2711_p3, %p2705_p4 }
  0x31   : > { %2715 = shalt.err (!%p2712_p1)
}
  0x32   : > { %s4132_s4 = sld [smem:[#allocation28_spill]]  ;;  %s2727_s28 = scalar_lea.vmem %s3103_s16, 16 }
  0x33   : > { %p2728_p9 = scmp.ne.s32.totalorder %s3103_s16, %s2727_s28  ;;  %s2734_s12 = scalar_lea.vmem %s3103_s16, 32 }
  0x34   : > { %p2735_p3 = scmp.lt.s32.totalorder %s3103_s16, %s3103_s16  ;;  %p2736_p1 = scmp.lt.s32.totalorder %s2734_s12, %s2727_s28 }
  0x35   : > { %p2730_p10 = pnand %p2728_p9, %p3107_p6 }
  0x36   : > { %p2737_p12 = por %p2736_p1, %p2735_p3 }
  0x37   : > { %p2731_p11 = pneg %p2730_p10 }
  0x38   : > { %2398 = dma.hbm_to_vmem [thread:$0]  (!%p3099_p5), %s4132_s4, 16, %s407_s22, [#allocation9]  }
  0x39   : > { %p2738_p13 = pnand %p2737_p12, %p2731_p11 }
  0x3b   : > { %2741 = shalt.err (!%p2738_p13)
}
  0x3c   : > { %s4133_s7 = sld [smem:[#allocation30_spill]]  ;;  %s2961_s22 = smov [#allocation7]  }
  0x3d   : > { %s392_s24 = sshll.u32 %s2961_s22, 4  ;;  %s2962_s19 = smov [#allocation10]   ;;  %s393_s24 = int_to_ptr.vmem [resolvable:$true] %s392_s24 }
  0x3e   : > { %s420_s21 = sshll.u32 %s2962_s19, 4  ;;  %s2753_s1 = scalar_lea.vmem %s393_s24, 16  ;;  %s421_s21 = int_to_ptr.vmem [resolvable:$true] %s420_s21 }
  0x3f   : > { %p2754_p0 = scmp.ne.s32.totalorder %s393_s24, %s2753_s1  ;;  %s2760_s28 = scalar_lea.vmem %s393_s24, 32 }
  0x40   : > { %p2761_p7 = scmp.lt.s32.totalorder %s393_s24, %s393_s24  ;;  %p2762_p8 = scmp.lt.s32.totalorder %s2760_s28, %s2753_s1 }
  0x41   : > { %p2756_p2 = pnand %p2754_p0, %p3107_p6 }
  0x42   : > { %2404 = dma.hbm_to_vmem [thread:$0]  (!%p3099_p5), %s4133_s7, 16, %s3103_s16, [#allocation12]  }
  0x43   : > { %p2757_p4 = pneg %p2756_p2  ;;  %p2763_p9 = por %p2762_p8, %p2761_p7 }
  0x45   : > { %p2764_p10 = pnand %p2763_p9, %p2757_p4 }
  0x47   : > { %2767 = shalt.err (!%p2764_p10)
}
  0x48   : > { %s4134_s2 = sld [smem:[#allocation27_spill]]  ;;  %s2779_s29 = scalar_lea.vmem %s421_s21, 16 }
  0x49   : > { %p2780_p11 = scmp.ne.s32.totalorder %s421_s21, %s2779_s29  ;;  %s2786_s20 = scalar_lea.vmem %s421_s21, 32 }
  0x4a   : > { %p2787_p12 = scmp.lt.s32.totalorder %s421_s21, %s421_s21  ;;  %p2788_p13 = scmp.lt.s32.totalorder %s2786_s20, %s2779_s29 }
  0x4b   : > { %p2782_p3 = pnand %p2780_p11, %p3107_p6 }
  0x4c   : > { %p2789_p0 = por %p2788_p13, %p2787_p12 }
  0x4d   : > { %p2783_p1 = pneg %p2782_p3 }
  0x4e   : > { %2395 = dma.hbm_to_vmem [thread:$0]  (!%p3099_p5), %s4134_s2, 16, %s393_s24, [#allocation6]  }
  0x4f   : > { %p2790_p2 = pnand %p2789_p0, %p2783_p1 }
  0x51   : > { %2793 = shalt.err (!%p2790_p2)
}
  0x52   : > { %s4135_s6 = sld [smem:[#allocation29_spill]]  ;;  %s2963_s24 = smov [#allocation13]  }
  0x53   : > { %s442_s19 = sshll.u32 %s2963_s24, 4  ;;  %s443_s19 = int_to_ptr.vmem [resolvable:$true] %s442_s19 }
  0x54   : > { %s2805_s28 = scalar_lea.vmem %s443_s19, 16  ;;  %s2812_s12 = scalar_lea.vmem %s443_s19, 32 }
  0x55   : > { %p2806_p4 = scmp.ne.s32.totalorder %s443_s19, %s2805_s28  ;;  %p2813_p9 = scmp.lt.s32.totalorder %s443_s19, %s443_s19 }
  0x56   : > { %p2814_p10 = scmp.lt.s32.totalorder %s2812_s12, %s2805_s28 }
  0x57   : > { %p2808_p7 = pnand %p2806_p4, %p3107_p6 }
  0x58   : > { %2401 = dma.hbm_to_vmem [thread:$0]  (!%p3099_p5), %s4135_s6, 16, %s421_s21, [#allocation9]  }
  0x59   : > { %p2809_p8 = pneg %p2808_p7  ;;  %p2815_p11 = por %p2814_p10, %p2813_p9 }
  0x5b   : > { %p2816_p3 = pnand %p2815_p11, %p2809_p8 }
  0x5d   : > { %2819 = shalt.err (!%p2816_p3)
}
  0x5e   : > { %s4136_s8 = sld [smem:[#allocation31_spill]]  ;;  %s2140_s13 = sadd.s32 4294967294, %s2956_s15  }
  0x5f   : > { %s44_s21 = sadd.s32 1, %s2948_s30  ;;  %s51_s23 = sadd.s32 1, %s2952_s14 }
  0x60   : > { %p45_p6 = scmp.ge.s32.totalorder %s44_s21, 2  ;;  %s62_s20 = sadd.s32 1, %s2936_s27 }
  0x61   : > { %p69_p1 = scmp.ne.s32.totalorder %s2936_s27, %s2932_s26  ;;  %p70_p12 = scmp.eq.s32.totalorder %s2956_s15, 0 }
  0x62   : > { %s4165_s21 = smov (%p45_p6, %s44_s21), 0  ;;  %s4167_s23 = smov (!%p45_p6, %s51_s23), %s2952_s14 }
  0x63   : > { %4137 = sst [smem:[#allocation23_spill]] %s4165_s21  ;;  %s58_s1 = ssub.s32 %s2948_s30, %s4165_s21 }
  0x64   : > { %2407 = dma.hbm_to_vmem [thread:$0]  (!%p3099_p5), %s4136_s8, 16, %s443_s19, [#allocation12]  }
  0x65   : > { %p53_p13 = scmp.ge.s32.totalorder %s4167_s23, 2  ;;  %p75_p5 = scmp.ne.s32.totalorder %s2932_s26, %s2928_s25 }
  0x66   : > { %p3173_p0 = por %p70_p12, %p69_p1  ;;  %s4139_s24 = sadd.s32 4294967295, %s2956_s15  }
  0x67   : > { %p355_p2 = scmp.eq.s32.totalorder %s4139_s24, 3  ;;  %s4169_s23 = smov (%p53_p13, %s4167_s23), 0 }
  0x68   : > { %4140 = sst [smem:[#allocation24_spill]] %s4169_s23  ;;  %p4141_p4 = scmp.ne.s32.totalorder %s4127_s17, 0 }
  0x69   : > { %p3187_p8 = por %p355_p2, %p69_p1  ;;  %s55_s12 = ssub.s32 %s2952_s14, %s4169_s23 }
  0x6a   : > { %p3183_p7 = por %p4141_p4, %p75_p5  ;;  %p361_p9 = scmp.eq.s32.totalorder %s2140_s13, 3 }
  0x6b   : > { %s4143_s28 = scalar_select %p3187_p8, 1, 0 }
  0x6c   : > { %s59_s16 = sor.u32 %s58_s1, %s55_s12  ;;  %p2422_p10 = scmp.lt.s32.totalorder %s2956_s15, 4 }
  0x6d   : > { %4144 = sst [smem:[#allocation25_spill]] %s4143_s28  ;;  %p60_p11 = scmp.eq.s32.totalorder %s59_s16, 0 }
  0x6e   : > { %p3194_p3 = por %p361_p9, %p75_p5  ;;  %s465_s24 = sand.u32 1, %s2936_s27  }
  0x6f   : > { %s2150_s2 = sshll.u32 %s2952_s14, 5  ;;  %s2149_s6 = sshll.u32 %s465_s24, 7 }
  0x70   : > { %s3201_s4 = scalar_select %p60_p11, %s2936_s27, %s62_s20  }
  0x71   : > { %s477_s7 = sadd.s32 %s2948_s30, %s2150_s2  ;;  %s469_s21 = scalar_lea.vmem [#allocation2], %s2149_s6 }
  0x72   : > { %s2151_s8 = sshll.u32 %s477_s7, 7  ;;  %s480_s25 = sshll.u32 %s469_s21, 4  ;;  %s481_s25 = int_to_ptr.vmem [resolvable:$true] %s480_s25 }
  0x73   : > { %s479_s13 = scalar_lea.hbm %s4092_s0, %s2151_s8  ;;  %p3211_p6 = pnand %p2422_p10, %p3173_p0 }
  0x74   : > { %s466_s12 = scalar_lea.sflag [#allocation3], %s465_s24  ;;  %s2833_s20 = scalar_lea.vmem %s481_s25, 2048 }
  0x75   : > { %p2822_p1 = pneg %p3211_p6  ;;  %p2834_p12 = scmp.ne.s32.totalorder %s481_s25, %s2833_s20 }
  0x76   : > { %s2964_s2 = smov [#allocation2]  }
  0x77   : > { %p2836_p13 = pnand %p2834_p12, %p2822_p1  ;;  %s2838_s6 = sshll.u32 %s2964_s2, 4  ;;  %s2839_s6 = int_to_ptr.vmem [resolvable:$false] %s2838_s6 }
  0x78   : > { %s2840_s7 = scalar_lea.vmem %s2839_s6, 4096  ;;  %p2841_p2 = scmp.lt.s32.totalorder %s481_s25, %s2839_s6 }
  0x79   : > { %p2837_p5 = pneg %p2836_p13  ;;  %p2842_p4 = scmp.lt.s32.totalorder %s2840_s7, %s2833_s20 }
  0x7b   : > { %p2843_p9 = por %p2842_p4, %p2841_p2 }
  0x7d   : > { %p2844_p11 = pnand %p2843_p9, %p2837_p5 }
  0x7f   : > { %2847 = shalt.err (!%p2844_p11)
}
  0x80   : > { %s2965_s8 = smov 256   ;;  %s2966_s21 = smov 128  }
  0x81   : > { %s2967_s23 = smov 8   ;;  %p4147_p0 = scmp.ne.s32.totalorder %s4128_s18, 0 }
  0x82   : > { %2411 = dma.hbm_to_vmem [thread:$0]  (!%p3211_p6), %s479_s13, 2048, %s481_s25, %s466_s12, %s2965_s8, %s2966_s21, %s2967_s23  }
  0x83   : > { %492 = sbr.rel (%p4147_p0) target bundleno = 1483 (0x5cb), region = 72  ;;  %s3222_s22 = sand.u32 (!%p4147_p0), 1, %s2932_s26  }
  0x84   : > { %s2153_s28 = sshll.u32 (!%p4147_p0), %s3222_s22, 7  ;;  %s495_s16 = scalar_lea.sflag (!%p4147_p0), [#allocation3], %s3222_s22 }
  0x85   : > { %s3228_s24 = scalar_lea.vmem (!%p4147_p0), [#allocation2], %s2153_s28 }
  0x88   : > { %2907 = dma.done.wait (%p3183_p7), %s495_s16, 2048  }
  0x89   : > { %2909 = vsyncadd (%p3183_p7), %s495_s16, 4294965248  ;;  %p4148_p10 = scmp.ne.s32.totalorder %s4127_s17, 0 }
  0x8b   : > { %2911 = dma.done.wait (%p4148_p10), [#allocation6], 32  }
  0x8c   : > { %2913 = vsyncadd (%p4148_p10), [#allocation6], 4294967264 }
  0x8d   : > { %2915 = dma.done.wait (%p4148_p10), [#allocation9], 32  }
  0x8e   : > { %2917 = vsyncadd (%p4148_p10), [#allocation9], 4294967264 }
  0x8f   : > { %2919 = dma.done.wait (%p4148_p10), [#allocation12], 32  }
  0x90   : > { %2921 = vsyncadd (%p4148_p10), [#allocation12], 4294967264  ;;  %vm586_vm0 = vcmask 261120   ;;  %v576_v0 = vld [vmem:[%s3228_s24 + $0x40] sm:$0xff]  ;;  %v578_v1 = vld [vmem:[%s3228_s24 + $0x50] sm:$0xff]  ;;  %vm1578_vm1 = vcmask 523264  }
  0x91   : > { %v577_v2 = vld [vmem:[%s3228_s24 + $0x48] sm:$0xff]  ;;  %v611_v3 = vsel %vm586_vm0, %v576_v0, 0.0  ;;  %v617_v4 = vsel %vm586_vm0, %v578_v1, 0.0  ;;  %v579_v5 = vld [vmem:[%s3228_s24 + $0x58] sm:$0xff]  ;;  %v3253_v6 = vld [vmem:[%s3228_s24 + $0x60] sm:$0xff]  ;;  %s4149_s17 = sld [smem:[#allocation32_spill]] }
  0x92   : > { %612 = vadd.xlane.f32.xlu0 %v611_v3  ;;  %618 = vadd.xlane.f32.xlu1 %v617_v4  ;;  %v3256_v7 = vld [vmem:[%s3228_s24 + $0x68] sm:$0xff]  ;;  %v614_v8 = vsel %vm586_vm0, %v577_v2, 0.0  ;;  %v620_v9 = vsel %vm586_vm0, %v579_v5, 0.0  ;;  %v3261_v10 = vld [vmem:[%s3228_s24 + $0x70] sm:$0xff]  ;;  %v3264_v11 = vld [vmem:[%s3228_s24 + $0x78] sm:$0xff]  ;;  %v623_v12 = vsel %vm586_vm0, %v3253_v6, 0.0 }
  0x93   : > { %v626_v13 = vsel %vm586_vm0, %v3256_v7, 0.0  ;;  %v629_v14 = vsel %vm586_vm0, %v3261_v10, 0.0  ;;  %v632_v15 = vsel %vm586_vm0, %v3264_v11, 0.0  ;;  %v3275_v16 = vld [vmem:[%s3228_s24] sm:$0xff]  ;;  %v3278_v17 = vld [vmem:[%s3228_s24 + $0x8] sm:$0xff]  ;;  %v3285_v20 = vld [vmem:[%s3228_s24 + $0x10] sm:$0xff] }
  0x94   : > { %v587_v18 = vsel %vm586_vm0, %v3275_v16, 0.0  ;;  %v590_v19 = vsel %vm586_vm0, %v3278_v17, 0.0  ;;  %v3288_v21 = vld [vmem:[%s3228_s24 + $0x18] sm:$0xff]  ;;  %v593_v22 = vsel %vm586_vm0, %v3285_v20, 0.0  ;;  %v3295_v24 = vld [vmem:[%s3228_s24 + $0x20] sm:$0xff]  ;;  %v3298_v25 = vld [vmem:[%s3228_s24 + $0x28] sm:$0xff] }
  0x95   : > { %v596_v23 = vsel %vm586_vm0, %v3288_v21, 0.0  ;;  %v599_v26 = vsel %vm586_vm0, %v3295_v24, 0.0  ;;  %v602_v27 = vsel %vm586_vm0, %v3298_v25, 0.0  ;;  %v3305_v28 = vld [vmem:[%s3228_s24 + $0x30] sm:$0xff]  ;;  %v3308_v29 = vld [vmem:[%s3228_s24 + $0x38] sm:$0xff]  ;;  %s3968_s18 = scalar_lea.vmem [#allocation14], %s2153_s28 }
  0x96   : > { %615 = vadd.xlane.f32.xlu0 %v614_v8  ;;  %621 = vadd.xlane.f32.xlu1 %v620_v9  ;;  %v605_v30 = vsel %vm586_vm0, %v3305_v28, 0.0  ;;  %v608_v31 = vsel %vm586_vm0, %v3308_v29, 0.0  ;;  %s4150_s28 = sld [smem:[#allocation22_spill]]  ;;  %s1987_s12 = sshll.u32 %s3968_s18, 4  ;;  %s4029_s12 = int_to_ptr.vmem [resolvable:$true] %s1987_s12 }
  0x97   : > { %s4151_s19 = sld [smem:[#allocation21_spill]]  ;;  %s1970_s23 = scalar_lea.sflag [#allocation4], %s3222_s22 }
  0x98   : > { %s4153_s8 = sld [smem:[#allocation33_spill]]  ;;  %s2848_s16 = scalar_lea.vmem %s4029_s12, 2048 }
  0x99   : > { %p2849_p7 = scmp.ne.s32.totalorder %s4029_s12, %s2848_s16  ;;  %s2968_s25 = smov [#allocation14]  }
  0x9a   : > { %624 = vadd.xlane.f32.xlu0 %v623_v12  ;;  %627 = vadd.xlane.f32.xlu1 %v626_v13 }
  0x9b   : > { %p2850_p6 = pnand %p2849_p7, %p3187_p8 }
  0x9c   : > { %s2215_s13 = sshll.u32 %s4150_s28, 5 }
  0x9d   : > { %s1984_s1 = sadd.s32 %s4151_s19, %s2215_s13  ;;  %p2851_p1 = pneg %p2850_p6 }
  0x9e   : > { %630 = vadd.xlane.f32.xlu0 %v629_v14  ;;  %633 = vadd.xlane.f32.xlu1 %v632_v15  ;;  %s2216_s2 = sshll.u32 %s1984_s1, 7 }
  0x9f   : > { %s4034_s21 = scalar_lea.hbm %s4153_s8, %s2216_s2 }
  0xa2   : > { %588 = vadd.xlane.f32.xlu0 %v587_v18  ;;  %591 = vadd.xlane.f32.xlu1 %v590_v19 }
  0xa6   : > { %594 = vadd.xlane.f32.xlu0 %v593_v22  ;;  %597 = vadd.xlane.f32.xlu1 %v596_v23 }
  0xaa   : > { %600 = vadd.xlane.f32.xlu0 %v599_v26  ;;  %603 = vadd.xlane.f32.xlu1 %v602_v27 }
  0xae   : > { %606 = vadd.xlane.f32.xlu0 %v605_v30  ;;  %609 = vadd.xlane.f32.xlu1 %v608_v31 }
 0x11b   : > { %v613_v32 = vpop.xlane.xlu0 %612  ;;  %v619_v33 = vpop.xlane.xlu1 %618 }
 0x11c   : > { %v644_v34 = vmul.f32 0.03125, %v613_v32  ;;  %v646_v35 = vmul.f32 0.03125, %v619_v33 }
 0x11e   : > { %v3314_v36 = vsub.f32 %v576_v0, %v644_v34  ;;  %v3316_v37 = vsub.f32 %v578_v1, %v646_v35 }
 0x11f   : > { %v616_v38 = vpop.xlane.xlu0 %615  ;;  %v622_v39 = vpop.xlane.xlu1 %621 }
 0x120   : > { %v645_v40 = vmul.f32 0.03125, %v616_v38  ;;  %v647_v41 = vmul.f32 0.03125, %v622_v39  ;;  %v676_v42 = vmul.f32 %v3314_v36, %v3314_v36  ;;  %v678_v43 = vmul.f32 %v3316_v37, %v3316_v37 }
 0x122   : > { %v3322_v44 = vsub.f32 %v577_v2, %v645_v40  ;;  %v3324_v45 = vsub.f32 %v579_v5, %v647_v41  ;;  %v708_v46 = vsel %vm586_vm0, %v676_v42, 0.0  ;;  %v714_v49 = vsel %vm586_vm0, %v678_v43, 0.0 }
 0x123   : > { %v625_v47 = vpop.xlane.xlu0 %624  ;;  %709 = vadd.xlane.f32.xlu0 %v708_v46  ;;  %v628_v48 = vpop.xlane.xlu1 %627 }
 0x124   : > { %v648_v50 = vmul.f32 0.03125, %v625_v47  ;;  %v649_v51 = vmul.f32 0.03125, %v628_v48  ;;  %v677_v52 = vmul.f32 %v3322_v44, %v3322_v44  ;;  %v679_v53 = vmul.f32 %v3324_v45, %v3324_v45 }
 0x126   : > { %v3333_v54 = vsub.f32 %v3253_v6, %v648_v50  ;;  %v3336_v55 = vsub.f32 %v3256_v7, %v649_v51  ;;  %v711_v56 = vsel %vm586_vm0, %v677_v52, 0.0  ;;  %v717_v59 = vsel %vm586_vm0, %v679_v53, 0.0  ;;  %v2507_v53 = vld [vmem:[%s4095_s3] sm:$0xff]  }
 0x127   : > { %v631_v57 = vpop.xlane.xlu0 %630  ;;  %712 = vadd.xlane.f32.xlu1 %v711_v56  ;;  %715 = vadd.xlane.f32.xlu0 %v714_v49  ;;  %v634_v58 = vpop.xlane.xlu1 %633  ;;  %v3415_v56 = vld [vmem:[%s4097_s5 + $0x8] sm:$0xff]  }
 0x128   : > { %v650_v60 = vmul.f32 0.03125, %v631_v57  ;;  %v651_v61 = vmul.f32 0.03125, %v634_v58  ;;  %v680_v62 = vmul.f32 %v3333_v54, %v3333_v54  ;;  %v681_v63 = vmul.f32 %v3336_v55, %v3336_v55 }
 0x12a   : > { %v3345_v0 = vsub.f32 %v3261_v10, %v650_v60  ;;  %v3348_v1 = vsub.f32 %v3264_v11, %v651_v61  ;;  %v720_v2 = vsel %vm586_vm0, %v680_v62, 0.0  ;;  %v723_v4 = vsel %vm586_vm0, %v681_v63, 0.0 }
 0x12b   : > { %718 = vadd.xlane.f32.xlu1 %v717_v59  ;;  %721 = vadd.xlane.f32.xlu0 %v720_v2  ;;  %v589_v3 = vpop.xlane.xlu0 %588  ;;  %v592_v5 = vpop.xlane.xlu1 %591 }
 0x12c   : > { %v636_v6 = vmul.f32 0.03125, %v589_v3  ;;  %v637_v7 = vmul.f32 0.03125, %v592_v5  ;;  %v682_v8 = vmul.f32 %v3345_v0, %v3345_v0  ;;  %v683_v9 = vmul.f32 %v3348_v1, %v3348_v1 }
 0x12e   : > { %v3357_v10 = vsub.f32 %v3275_v16, %v636_v6  ;;  %v3360_v11 = vsub.f32 %v3278_v17, %v637_v7  ;;  %v726_v12 = vsel %vm586_vm0, %v682_v8, 0.0  ;;  %v729_v14 = vsel %vm586_vm0, %v683_v9, 0.0 }
 0x12f   : > { %724 = vadd.xlane.f32.xlu1 %v723_v4  ;;  %727 = vadd.xlane.f32.xlu0 %v726_v12  ;;  %v595_v13 = vpop.xlane.xlu0 %594  ;;  %v598_v15 = vpop.xlane.xlu1 %597 }
 0x130   : > { %v638_v18 = vmul.f32 0.03125, %v595_v13  ;;  %v639_v19 = vmul.f32 0.03125, %v598_v15  ;;  %v668_v22 = vmul.f32 %v3357_v10, %v3357_v10  ;;  %v669_v16 = vmul.f32 %v3360_v11, %v3360_v11 }
 0x132   : > { %v3369_v23 = vsub.f32 %v3285_v20, %v638_v18  ;;  %v3372_v17 = vsub.f32 %v3288_v21, %v639_v19  ;;  %v684_v26 = vsel %vm586_vm0, %v668_v22, 0.0  ;;  %v687_v30 = vsel %vm586_vm0, %v669_v16, 0.0 }
 0x133   : > { %730 = vadd.xlane.f32.xlu1 %v729_v14  ;;  %685 = vadd.xlane.f32.xlu0 %v684_v26  ;;  %v601_v27 = vpop.xlane.xlu0 %600  ;;  %v604_v31 = vpop.xlane.xlu1 %603 }
 0x134   : > { %v640_v32 = vmul.f32 0.03125, %v601_v27  ;;  %v641_v33 = vmul.f32 0.03125, %v604_v31  ;;  %v670_v34 = vmul.f32 %v3369_v23, %v3369_v23  ;;  %v671_v20 = vmul.f32 %v3372_v17, %v3372_v17 }
 0x136   : > { %v3381_v35 = vsub.f32 %v3295_v24, %v640_v32  ;;  %v3384_v21 = vsub.f32 %v3298_v25, %v641_v33  ;;  %v690_v38 = vsel %vm586_vm0, %v670_v34, 0.0  ;;  %v693_v40 = vsel %vm586_vm0, %v671_v20, 0.0  ;;  %v3418_v33 = vld [vmem:[#allocation5] ss:$0 sm:$0xff] }
 0x137   : > { %688 = vadd.xlane.f32.xlu1 %v687_v30  ;;  %691 = vadd.xlane.f32.xlu0 %v690_v38  ;;  %v607_v39 = vpop.xlane.xlu0 %606  ;;  %v610_v41 = vpop.xlane.xlu1 %609 }
 0x138   : > { %v642_v42 = vmul.f32 0.03125, %v607_v39  ;;  %v643_v43 = vmul.f32 0.03125, %v610_v41  ;;  %v672_v46 = vmul.f32 %v3381_v35, %v3381_v35  ;;  %v673_v24 = vmul.f32 %v3384_v21, %v3384_v21 }
 0x13a   : > { %v3393_v47 = vsub.f32 %v3305_v28, %v642_v42  ;;  %v3396_v25 = vsub.f32 %v3308_v29, %v643_v43  ;;  %v696_v48 = vsel %vm586_vm0, %v672_v46, 0.0  ;;  %v699_v49 = vsel %vm586_vm0, %v673_v24, 0.0  ;;  %v2506_v29 = vld [vmem:[%s4095_s3 + $0x8] sm:$0xff]  }
 0x13b   : > { %694 = vadd.xlane.f32.xlu1 %v693_v40  ;;  %697 = vadd.xlane.f32.xlu0 %v696_v48  ;;  %v3422_v48 = vld [vmem:[#allocation7] ss:$0 sm:$0xff] }
 0x13c   : > { %v674_v50 = vmul.f32 %v3393_v47, %v3393_v47  ;;  %v675_v51 = vmul.f32 %v3396_v25, %v3396_v25  ;;  %2357 = vmatprep.subr.bf16.mxu1 %v2506_v29  ;;  %2265 = vmatprep.subr.bf16.mxu0 %v2506_v29 }
 0x13d   : > { %2359 = vmatpush3.bf16.msra.mxu1 %v2506_v29  ;;  %2266 = vmatpush3.bf16.msra.mxu0 %v2506_v29 }
 0x13e   : > { %v702_v52 = vsel %vm586_vm0, %v674_v50, 0.0  ;;  %v705_v28 = vsel %vm586_vm0, %v675_v51, 0.0  ;;  %2358 = vmatprep.subr.bf16.mxu1 %v2507_v53  ;;  %2267 = vmatprep.subr.bf16.mxu0 %v2507_v53 }
 0x13f   : > { %700 = vadd.xlane.f32.xlu1 %v699_v49  ;;  %703 = vadd.xlane.f32.xlu0 %v702_v52 }
 0x141   : > { %2360 = vmatpush3.bf16.msra.mxu1 %v2507_v53  ;;  %2268 = vmatpush3.bf16.msra.mxu0 %v2507_v53 }
 0x142   : > { %2285 = vmatprep.subr.bf16.mxu1 %v3415_v56 }
 0x143   : > { %706 = vadd.xlane.f32.xlu1 %v705_v28 }
 0x1ac   : > { %v710_v57 = vpop.xlane.xlu0 %709 }
 0x1ad   : > { %v740_v58 = vmul.f32 0.03125, %v710_v57 }
 0x1af   : > { %v756_v59 = vadd.f32 1e-06, %v740_v58 }
 0x1b0   : > { %v713_v60 = vpop.xlane.xlu1 %712  ;;  %v716_v61 = vpop.xlane.xlu0 %715 }
 0x1b1   : > { %2520 = vrsqrt.f32 %v756_v59  ;;  %v741_v62 = vmul.f32 0.03125, %v713_v60  ;;  %v742_v63 = vmul.f32 0.03125, %v716_v61 }
 0x1b3   : > { %v757_v2 = vadd.f32 1e-06, %v741_v62  ;;  %v758_v3 = vadd.f32 1e-06, %v742_v63 }
 0x1b4   : > { %v719_v4 = vpop.xlane.xlu1 %718  ;;  %v722_v5 = vpop.xlane.xlu0 %721 }
 0x1b5   : > { %2522 = vrsqrt.f32 %v757_v2  ;;  %v743_v6 = vmul.f32 0.03125, %v719_v4  ;;  %v744_v7 = vmul.f32 0.03125, %v722_v5 }
 0x1b6   : > { %2524 = vrsqrt.f32 %v758_v3 }
 0x1b7   : > { %v759_v8 = vadd.f32 1e-06, %v743_v6  ;;  %v760_v9 = vadd.f32 1e-06, %v744_v7 }
 0x1b8   : > { %v725_v12 = vpop.xlane.xlu1 %724  ;;  %v728_v13 = vpop.xlane.xlu0 %727 }
 0x1b9   : > { %2526 = vrsqrt.f32 %v759_v8  ;;  %v745_v14 = vmul.f32 0.03125, %v725_v12  ;;  %v746_v15 = vmul.f32 0.03125, %v728_v13 }
 0x1ba   : > { %2528 = vrsqrt.f32 %v760_v9 }
 0x1bb   : > { %v761_v18 = vadd.f32 1e-06, %v745_v14  ;;  %v762_v19 = vadd.f32 1e-06, %v746_v15 }
 0x1bc   : > { %v731_v22 = vpop.xlane.xlu1 %730  ;;  %v686_v16 = vpop.xlane.xlu0 %685 }
 0x1bd   : > { %2530 = vrsqrt.f32 %v761_v18  ;;  %v747_v26 = vmul.f32 0.03125, %v731_v22  ;;  %v732_v27 = vmul.f32 0.03125, %v686_v16 }
 0x1be   : > { %v2521_v30 = vpop.eup %2520  ;;  %2532 = vrsqrt.f32 %v762_v19 }
 0x1bf   : > { %v763_v31 = vadd.f32 1e-06, %v747_v26  ;;  %v748_v32 = vadd.f32 1e-06, %v732_v27  ;;  %v788_v34 = vmul.f32 %v2521_v30, %v3314_v36 }
 0x1c0   : > { %v689_v20 = vpop.xlane.xlu1 %688  ;;  %v692_v38 = vpop.xlane.xlu0 %691 }
 0x1c1   : > { %2534 = vrsqrt.f32 %v763_v31  ;;  %v733_v39 = vmul.f32 0.03125, %v689_v20  ;;  %v734_v40 = vmul.f32 0.03125, %v692_v38  ;;  %v810_v42 = vmul.f32 %v3418_v33, %v788_v34 }
 0x1c2   : > { %v2523_v41 = vpop.eup %2522  ;;  %2536 = vrsqrt.f32 %v748_v32 }
 0x1c3   : > { %v2525_v43 = vpop.eup %2524  ;;  %v749_v46 = vadd.f32 1e-06, %v733_v39  ;;  %v750_v24 = vadd.f32 1e-06, %v734_v40  ;;  %v789_v49 = vmul.f32 %v2523_v41, %v3322_v44  ;;  %v832_v57 = vadd.f32 %v3422_v48, %v810_v42 }
 0x1c4   : > { %v695_v50 = vpop.xlane.xlu1 %694  ;;  %v698_v51 = vpop.xlane.xlu0 %697  ;;  %v790_v36 = vmul.f32 %v2525_v43, %v3316_v37 }
 0x1c5   : > { %2538 = vrsqrt.f32 %v749_v46  ;;  %v735_v52 = vmul.f32 0.03125, %v695_v50  ;;  %v736_v28 = vmul.f32 0.03125, %v698_v51  ;;  %v811_v29 = vmul.f32 %v3418_v33, %v789_v49 }
 0x1c6   : > { %v2527_v53 = vpop.eup %2526  ;;  %2540 = vrsqrt.f32 %v750_v24  ;;  %v812_v37 = vmul.f32 %v3418_v33, %v790_v36 }
 0x1c7   : > { %v2529_v58 = vpop.eup %2528  ;;  %v751_v59 = vadd.f32 1e-06, %v735_v52  ;;  %v752_v60 = vadd.f32 1e-06, %v736_v28  ;;  %v833_v61 = vadd.f32 %v3422_v48, %v811_v29  ;;  %v791_v44 = vmul.f32 %v2527_v53, %v3324_v45 }
 0x1c8   : > { %v701_v62 = vpop.xlane.xlu1 %700  ;;  %v704_v63 = vpop.xlane.xlu0 %703  ;;  %v792_v2 = vmul.f32 %v2529_v58, %v3333_v54  ;;  %v834_v14 = vadd.f32 %v3422_v48, %v812_v37 }
 0x1c9   : > { %2542 = vrsqrt.f32 %v751_v59  ;;  %v737_v3 = vmul.f32 0.03125, %v701_v62  ;;  %v738_v4 = vmul.f32 0.03125, %v704_v63  ;;  %v3432_v5 = vpack.c.bf16 %v833_v61, %v832_v57 }
 0x1ca   : > { %v2531_v6 = vpop.eup %2530  ;;  %2544 = vrsqrt.f32 %v752_v60  ;;  %v813_v7 = vmul.f32 %v3418_v33, %v791_v44  ;;  %v814_v8 = vmul.f32 %v3418_v33, %v792_v2 }
 0x1cb   : > { %v2533_v9 = vpop.eup %2532  ;;  %v753_v12 = vadd.f32 1e-06, %v737_v3  ;;  %v754_v45 = vadd.f32 1e-06, %v738_v4  ;;  %2277 = vmatprep.mubr.msk.bf16.mxu1 %vm586_vm0, %v3432_v5  ;;  %v793_v13 = vmul.f32 %v2531_v6, %v3336_v55  ;;  %v2509_v55 = vld [vmem:[%s4097_s5] sm:$0xff]  }
 0x1cc   : > { %v707_v54 = vpop.xlane.xlu1 %706  ;;  %v835_v15 = vadd.f32 %v3422_v48, %v813_v7  ;;  %v794_v18 = vmul.f32 %v2533_v9, %v3345_v0  ;;  %v836_v27 = vadd.f32 %v3422_v48, %v814_v8 }
 0x1cd   : > { %2546 = vrsqrt.f32 %v753_v12  ;;  %v739_v19 = vmul.f32 0.03125, %v707_v54  ;;  %v815_v22 = vmul.f32 %v3418_v33, %v793_v13 }
 0x1ce   : > { %v2535_v16 = vpop.eup %2534  ;;  %2548 = vrsqrt.f32 %v754_v45  ;;  %v3443_v26 = vpack.c.bf16 %v835_v15, %v834_v14  ;;  %v816_v34 = vmul.f32 %v3418_v33, %v794_v18 }
 0x1cf   : > { %v2537_v30 = vpop.eup %2536  ;;  %v755_v31 = vadd.f32 1e-06, %v739_v19  ;;  %v837_v32 = vadd.f32 %v3422_v48, %v815_v22  ;;  %v795_v0 = vmul.f32 %v2535_v16, %v3348_v1  ;;  %v3514_v19 = vld [vmem:[#allocation10] ss:$0 sm:$0xff] }
 0x1d0   : > { %2278 = vmatmul.mubr.msk.bf16.vlgmr.msra.gmra.mxu1 %vm586_vm0, %v3443_v26  ;;  %v780_v20 = vmul.f32 %v2537_v30, %v3357_v10  ;;  %v838_v1 = vadd.f32 %v3422_v48, %v816_v34 }
 0x1d1   : > { %2550 = vrsqrt.f32 %v755_v31  ;;  %v846_v38 = vpack.c.bf16 %v837_v32, %v836_v27  ;;  %v817_v39 = vmul.f32 %v3418_v33, %v795_v0  ;;  %2286 = vmatpush3.bf16.msra.mxu1 %v3415_v56 }
 0x1d2   : > { %v2539_v40 = vpop.eup %2538  ;;  %2287 = vmatprep.subr.bf16.mxu1 %v2509_v55  ;;  %v802_v46 = vmul.f32 %v3418_v33, %v780_v20 }
 0x1d3   : > { %v2541_v41 = vpop.eup %2540  ;;  %2281 = vmatprep.mubr.msk.bf16.mxu1 %vm586_vm0, %v846_v38  ;;  %v839_v42 = vadd.f32 %v3422_v48, %v817_v39  ;;  %v781_v43 = vmul.f32 %v2539_v40, %v3360_v11 }
 0x1d4   : > { %v782_v10 = vmul.f32 %v2541_v41, %v3369_v23  ;;  %v824_v36 = vadd.f32 %v3422_v48, %v802_v46 }
 0x1d5   : > { %v847_v24 = vpack.c.bf16 %v839_v42, %v838_v1  ;;  %v803_v49 = vmul.f32 %v3418_v33, %v781_v43  ;;  %2288 = vmatpush3.bf16.msra.mxu1 %v2509_v55 }
 0x1d6   : > { %v2543_v56 = vpop.eup %2542  ;;  %v804_v50 = vmul.f32 %v3418_v33, %v782_v10 }
 0x1d7   : > { %v2545_v51 = vpop.eup %2544  ;;  %v825_v52 = vadd.f32 %v3422_v48, %v803_v49  ;;  %v783_v28 = vmul.f32 %v2543_v56, %v3372_v17 }
 0x1d8   : > { %2282 = vmatmul.mubr.msk.bf16.gmra.mxu1 %vm586_vm0, %v847_v24  ;;  %v784_v11 = vmul.f32 %v2545_v51, %v3381_v35  ;;  %v826_v57 = vadd.f32 %v3422_v48, %v804_v50 }
 0x1d9   : > { %v840_v29 = vpack.c.bf16 %v825_v52, %v824_v36  ;;  %v805_v23 = vmul.f32 %v3418_v33, %v783_v28 }
 0x1da   : > { %v2547_v53 = vpop.eup %2546  ;;  %v806_v17 = vmul.f32 %v3418_v33, %v784_v11 }
 0x1db   : > { %v2549_v58 = vpop.eup %2548  ;;  %2269 = vmatprep.mubr.msk.bf16.mxu0 %vm586_vm0, %v840_v29  ;;  %2289 = vmatprep.mubr.msk.bf16.mxu1 %vm586_vm0, %v840_v29  ;;  %v827_v59 = vadd.f32 %v3422_v48, %v805_v23  ;;  %v785_v60 = vmul.f32 %v2547_v53, %v3384_v21 }
 0x1dc   : > { %v786_v61 = vmul.f32 %v2549_v58, %v3393_v47  ;;  %v828_v63 = vadd.f32 %v3422_v48, %v806_v17 }
 0x1dd   : > { %v841_v35 = vpack.c.bf16 %v827_v59, %v826_v57  ;;  %v807_v44 = vmul.f32 %v3418_v33, %v785_v60 }
 0x1de   : > { %v2551_v62 = vpop.eup %2550  ;;  %v808_v3 = vmul.f32 %v3418_v33, %v786_v61 }
 0x1df   : > { %2270 = vmatmul.mubr.msk.bf16.vlgmr.msra.gmra.mxu0 %vm586_vm0, %v841_v35  ;;  %v829_v37 = vadd.f32 %v3422_v48, %v807_v44  ;;  %v787_v2 = vmul.f32 %v2551_v62, %v3396_v25 }
 0x1e0   : > { %2290 = vmatmul.mubr.msk.bf16.vlgmr.msra.gmra.mxu1 %vm586_vm0, %v841_v35  ;;  %v830_v47 = vadd.f32 %v3422_v48, %v808_v3 }
 0x1e1   : > { %v842_v21 = vpack.c.bf16 %v829_v37, %v828_v63  ;;  %v809_v4 = vmul.f32 %v3418_v33, %v787_v2 }
 0x1e3   : > { %2273 = vmatprep.mubr.msk.bf16.mxu0 %vm586_vm0, %v842_v21  ;;  %2293 = vmatprep.mubr.msk.bf16.mxu1 %vm586_vm0, %v842_v21  ;;  %v831_v6 = vadd.f32 %v3422_v48, %v809_v4 }
 0x1e5   : > { %v843_v7 = vpack.c.bf16 %v831_v6, %v830_v47 }
 0x1e7   : > { %2274 = vmatmul.mubr.msk.bf16.gmra.mxu0 %vm586_vm0, %v843_v7 }
 0x1e8   : > { %2294 = vmatmul.mubr.msk.bf16.gmra.mxu1 %vm586_vm0, %v843_v7 }
 0x1e9   : > { %2297 = vmatprep.mubr.msk.bf16.mxu1 %vm586_vm0, %v3432_v5 }
 0x1f0   : > { %2298 = vmatmul.mubr.msk.bf16.gmra.mxu1 %vm586_vm0, %v3443_v26 }
 0x1f1   : > { %2301 = vmatprep.mubr.msk.bf16.mxu1 %vm586_vm0, %v846_v38 }
 0x1f8   : > { %2302 = vmatmul.mubr.msk.bf16.gmra.mxu1 %vm586_vm0, %v847_v24 }
 0x290   : > { %v3498_v25 = vpop.f32.mrf.mxu1 }
 0x292   : > { %v3500_v33 = vpop.f32.mrf.mxu1 }
 0x294   : > { %v3502_v48 = vpop.f32.mrf.mxu1 }
 0x296   : > { %v3504_v8 = vpop.f32.mrf.mxu1 }
 0x298   : > { %v3506_v9 = vpop.f32.mrf.mxu1 }
 0x29a   : > { %v3508_v12 = vpop.f32.mrf.mxu1 }
 0x29c   : > { %v3510_v5 = vpop.f32.mrf.mxu1 }
 0x29e   : > { %v3512_v45 = vpop.f32.mrf.mxu1 }
 0x2a0   : > { %v2291_v13 = vpop.f32.mrf.mxu1 }
 0x2a1   : > { %v3517_v16 = vadd.f32 %v2291_v13, %v3514_v19 }
 0x2a2   : > { %v1049_v54 = vpop.f32.mrf.mxu1 }
 0x2a3   : > { %v3521_v55 = vadd.f32 %v3514_v19, %v1049_v54  ;;  %v1210_v34 = vmul.f32 0.70710677, %v3517_v16 }
 0x2a4   : > { %v2292_v14 = vpop.f32.mrf.mxu1 }
 0x2a5   : > { %v3525_v0 = vadd.f32 %v2292_v14, %v3514_v19  ;;  %v1208_v40 = vmul.f32 0.70710677, %v3521_v55 }
 0x2a6   : > { %v1052_v15 = vpop.f32.mrf.mxu1 }
 0x2a7   : > { %v1211_v1 = vmul.f32 0.70710677, %v3525_v0  ;;  %v3532_v42 = vadd.f32 %v3514_v19, %v1052_v15 }
 0x2a8   : > { %v2295_v18 = vpop.f32.mrf.mxu1 }
 0x2a9   : > { %v1074_v26 = vadd.f32 %v2295_v18, %v3514_v19  ;;  %v1209_v56 = vmul.f32 0.70710677, %v3532_v42 }
 0x2aa   : > { %v1065_v22 = vpop.f32.mrf.mxu1 }
 0x2ab   : > { %v1214_v30 = vmul.f32 0.70710677, %v1074_v26  ;;  %v1066_v31 = vadd.f32 %v3514_v19, %v1065_v22  ;;  %v1198_v17 = vmul.f32 0.5, %v1074_v26 }
 0x2ac   : > { %v2296_v27 = vpop.f32.mrf.mxu1 }
 0x2ad   : > { %2552 = verf.f32 %v1214_v30  ;;  %v1212_v20 = vmul.f32 0.70710677, %v1066_v31  ;;  %v1077_v39 = vadd.f32 %v2296_v27, %v3514_v19  ;;  %v1196_v4 = vmul.f32 0.5, %v1066_v31 }
 0x2ae   : > { %v1068_v32 = vpop.f32.mrf.mxu1 }
 0x2af   : > { %2554 = verf.f32 %v1212_v20  ;;  %v1215_v43 = vmul.f32 0.70710677, %v1077_v39  ;;  %v1069_v46 = vadd.f32 %v3514_v19, %v1068_v32  ;;  %v1199_v47 = vmul.f32 0.5, %v1077_v39 }
 0x2b0   : > { %v2299_v38 = vpop.f32.mrf.mxu1  ;;  %2556 = verf.f32 %v1210_v34  ;;  %v1194_v32 = vmul.f32 0.5, %v3517_v16 }
 0x2b1   : > { %2558 = verf.f32 %v1215_v43  ;;  %v1213_v24 = vmul.f32 0.70710677, %v1069_v46  ;;  %v3541_v28 = vadd.f32 %v2299_v38, %v3514_v19  ;;  %v1197_v34 = vmul.f32 0.5, %v1069_v46 }
 0x2b2   : > { %v1081_v41 = vpop.f32.mrf.mxu1  ;;  %2560 = verf.f32 %v1208_v40  ;;  %v1195_v46 = vmul.f32 0.5, %v3525_v0 }
 0x2b3   : > { %2562 = verf.f32 %v1211_v1  ;;  %v3550_v57 = vadd.f32 %v3514_v19, %v1081_v41  ;;  %v1218_v62 = vmul.f32 0.70710677, %v3541_v28 }
 0x2b4   : > { %v2300_v10 = vpop.f32.mrf.mxu1  ;;  %2564 = verf.f32 %v1213_v24 }
 0x2b5   : > { %2566 = verf.f32 %v1209_v56  ;;  %v3554_v61 = vadd.f32 %v2300_v10, %v3514_v19  ;;  %v1216_v6 = vmul.f32 0.70710677, %v3550_v57  ;;  %v1192_v10 = vmul.f32 0.5, %v3521_v55 }
 0x2b6   : > { %v1084_v49 = vpop.f32.mrf.mxu1  ;;  %v1193_v55 = vmul.f32 0.5, %v3532_v42 }
 0x2b7   : > { %v1219_v54 = vmul.f32 0.70710677, %v3554_v61  ;;  %v3567_v14 = vadd.f32 %v3514_v19, %v1084_v49 }
 0x2b8   : > { %v2303_v50 = vpop.f32.mrf.mxu1 }
 0x2b9   : > { %v3537_v51 = vadd.f32 %v2303_v50, %v3514_v19  ;;  %v1217_v20 = vmul.f32 0.70710677, %v3567_v14 }
 0x2ba   : > { %v1097_v36 = vpop.f32.mrf.mxu1  ;;  %v2553_v23 = vpop.eup %2552 }
 0x2bb   : > { %v1222_v52 = vmul.f32 0.70710677, %v3537_v51  ;;  %v3544_v11 = vadd.f32 %v3514_v19, %v1097_v36  ;;  %v1246_v63 = vadd.f32 1.0, %v2553_v23  ;;  %v1206_v36 = vmul.f32 0.5, %v3537_v51 }
 0x2bc   : > { %v2304_v29 = vpop.f32.mrf.mxu1  ;;  %v2555_v60 = vpop.eup %2554 }
 0x2bd   : > { %v3547_v53 = vadd.f32 %v2304_v29, %v3514_v19  ;;  %2568 = verf.f32 %v1222_v52  ;;  %v1220_v58 = vmul.f32 0.70710677, %v3544_v11  ;;  %v1244_v37 = vadd.f32 1.0, %v2555_v60  ;;  %v2557_v2 = vpop.eup %2556 }
 0x2be   : > { %v1100_v59 = vpop.f32.mrf.mxu1  ;;  %v2559_v21 = vpop.eup %2558  ;;  %v3563_v7 = vmul.f32 %v1246_v63, %v1198_v17  ;;  %v1242_v27 = vadd.f32 1.0, %v2557_v2 }
 0x2bf   : > { %v1223_v35 = vmul.f32 0.70710677, %v3547_v53  ;;  %v3558_v44 = vadd.f32 %v3514_v19, %v1100_v59  ;;  %2570 = verf.f32 %v1220_v58  ;;  %v2561_v13 = vpop.eup %2560  ;;  %v1247_v15 = vadd.f32 1.0, %v2559_v21 }
 0x2c0   : > { %v2563_v18 = vpop.eup %2562  ;;  %v1292_v22 = vsel %vm586_vm0, %v3563_v7, 0.0  ;;  %v3571_v26 = vmul.f32 %v1244_v37, %v1196_v4  ;;  %v3583_v43 = vmul.f32 %v1242_v27, %v1194_v32  ;;  %v1240_v16 = vadd.f32 1.0, %v2561_v13 }
 0x2c1   : > { %2572 = verf.f32 %v1223_v35  ;;  %v1221_v3 = vmul.f32 0.70710677, %v3558_v44  ;;  %v2565_v30 = vpop.eup %2564  ;;  %1293 = vadd.xlane.f32.xlu0 %v1292_v22  ;;  %v3573_v31 = vmul.f32 %v1247_v15, %v1199_v47  ;;  %v1243_v39 = vadd.f32 1.0, %v2563_v18 }
 0x2c2   : > { %v1245_v19 = vadd.f32 1.0, %v2565_v30  ;;  %v2567_v40 = vpop.eup %2566  ;;  %v1286_v41 = vsel %vm586_vm0, %v3571_v26, 0.0  ;;  %v1280_v52 = vsel %vm586_vm0, %v3583_v43, 0.0  ;;  %v3594_v29 = vmul.f32 %v1240_v16, %v1192_v10 }
 0x2c3   : > { %2574 = verf.f32 %v1221_v3  ;;  %v1295_v38 = vsel %vm586_vm0, %v3573_v31, 0.0  ;;  %v3589_v56 = vmul.f32 %v1243_v39, %v1195_v46  ;;  %v1241_v50 = vadd.f32 1.0, %v2567_v40 }
 0x2c4   : > { %2576 = verf.f32 %v1218_v62  ;;  %1296 = vadd.xlane.f32.xlu1 %v1295_v38  ;;  %v3581_v1 = vmul.f32 %v1245_v19, %v1197_v34  ;;  %v1207_v60 = vmul.f32 0.5, %v3547_v53  ;;  %v1274_v63 = vsel %vm586_vm0, %v3594_v29, 0.0 }
 0x2c5   : > { %2578 = verf.f32 %v1216_v6  ;;  %1287 = vadd.xlane.f32.xlu0 %v1286_v41  ;;  %v1283_v17 = vsel %vm586_vm0, %v3589_v56, 0.0  ;;  %v3602_v51 = vmul.f32 %v1241_v50, %v1193_v55  ;;  %v1204_v3 = vmul.f32 0.5, %v3544_v11 }
 0x2c6   : > { %2580 = verf.f32 %v1219_v54  ;;  %v1289_v49 = vsel %vm586_vm0, %v3581_v1, 0.0  ;;  %v1205_v15 = vmul.f32 0.5, %v3558_v44  ;;  %v1202_v11 = vmul.f32 0.5, %v3541_v28 }
 0x2c7   : > { %2582 = verf.f32 %v1217_v20  ;;  %v1277_v4 = vsel %vm586_vm0, %v3602_v51, 0.0  ;;  %v1203_v20 = vmul.f32 0.5, %v3554_v61  ;;  %v1200_v44 = vmul.f32 0.5, %v3550_v57 }
 0x2c8   : > { %1290 = vadd.xlane.f32.xlu1 %v1289_v49  ;;  %v1201_v16 = vmul.f32 0.5, %v3567_v14 }
 0x2c9   : > { %1281 = vadd.xlane.f32.xlu0 %v1280_v52 }
 0x2ca   : > { %v2569_v24 = vpop.eup %2568 }
 0x2cb   : > { %v1254_v0 = vadd.f32 1.0, %v2569_v24 }
 0x2cc   : > { %v2571_v23 = vpop.eup %2570  ;;  %1284 = vadd.xlane.f32.xlu1 %v1283_v17 }
 0x2cd   : > { %v3597_v59 = vmul.f32 %v1254_v0, %v1206_v36  ;;  %v1252_v37 = vadd.f32 1.0, %v2571_v23  ;;  %1275 = vadd.xlane.f32.xlu0 %v1274_v63 }
 0x2ce   : > { %v2573_v58 = vpop.eup %2572 }
 0x2cf   : > { %v1255_v35 = vadd.f32 1.0, %v2573_v58  ;;  %v1316_v53 = vsel %vm586_vm0, %v3597_v59, 0.0  ;;  %v3613_v13 = vmul.f32 %v1252_v37, %v1204_v3 }
 0x2d0   : > { %v2575_v62 = vpop.eup %2574  ;;  %1278 = vadd.xlane.f32.xlu1 %v1277_v4 }
 0x2d1   : > { %v2577_v2 = vpop.eup %2576  ;;  %v3606_v42 = vmul.f32 %v1255_v35, %v1207_v60  ;;  %v1253_v47 = vadd.f32 1.0, %v2575_v62  ;;  %1317 = vadd.xlane.f32.xlu0 %v1316_v53  ;;  %v1310_v32 = vsel %vm586_vm0, %v3613_v13, 0.0 }
 0x2d2   : > { %v2579_v21 = vpop.eup %2578  ;;  %v1250_v54 = vadd.f32 1.0, %v2577_v2 }
 0x2d3   : > { %v2581_v6 = vpop.eup %2580  ;;  %v1319_v18 = vsel %vm586_vm0, %v3606_v42, 0.0  ;;  %v3619_v22 = vmul.f32 %v1253_v47, %v1205_v15  ;;  %v1248_v19 = vadd.f32 1.0, %v2579_v21 }
 0x2d4   : > { %v1251_v27 = vadd.f32 1.0, %v2581_v6  ;;  %v2583_v30 = vpop.eup %2582  ;;  %1320 = vadd.xlane.f32.xlu1 %v1319_v18  ;;  %v3623_v34 = vmul.f32 %v1250_v54, %v1202_v11 }
 0x2d5   : > { %1311 = vadd.xlane.f32.xlu0 %v1310_v32  ;;  %v1313_v38 = vsel %vm586_vm0, %v3619_v22, 0.0  ;;  %v1249_v39 = vadd.f32 1.0, %v2583_v30  ;;  %v3633_v41 = vmul.f32 %v1248_v19, %v1200_v44 }
 0x2d6   : > { %v3629_v28 = vmul.f32 %v1251_v27, %v1203_v20  ;;  %v1304_v40 = vsel %vm586_vm0, %v3623_v34, 0.0 }
 0x2d7   : > { %v3638_v46 = vmul.f32 %v1249_v39, %v1201_v16  ;;  %v1298_v57 = vsel %vm586_vm0, %v3633_v41, 0.0 }
 0x2d8   : > { %1314 = vadd.xlane.f32.xlu1 %v1313_v38  ;;  %v1307_v61 = vsel %vm586_vm0, %v3629_v28, 0.0 }
 0x2d9   : > { %1305 = vadd.xlane.f32.xlu0 %v1304_v40  ;;  %v1301_v10 = vsel %vm586_vm0, %v3638_v46, 0.0 }
 0x2dc   : > { %1308 = vadd.xlane.f32.xlu1 %v1307_v61 }
 0x2dd   : > { %1299 = vadd.xlane.f32.xlu0 %v1298_v57 }
 0x2e0   : > { %1302 = vadd.xlane.f32.xlu1 %v1301_v10 }
 0x34a   : > { %v1294_v24 = vpop.xlane.xlu0 %1293 }
 0x34b   : > { %v1328_v49 = vmul.f32 0.03125, %v1294_v24 }
 0x34d   : > { %v3645_v50 = vsub.f32 %v3563_v7, %v1328_v49  ;;  %v1297_v14 = vpop.xlane.xlu1 %1296 }
 0x34e   : > { %v1329_v36 = vmul.f32 0.03125, %v1297_v14  ;;  %v1288_v52 = vpop.xlane.xlu0 %1287 }
 0x34f   : > { %v1326_v0 = vmul.f32 0.03125, %v1288_v52  ;;  %v1360_v23 = vmul.f32 %v3645_v50, %v3645_v50 }
 0x350   : > { %v3650_v55 = vsub.f32 %v3573_v31, %v1329_v36 }
 0x351   : > { %v3653_v58 = vsub.f32 %v3571_v26, %v1326_v0  ;;  %v1291_v60 = vpop.xlane.xlu1 %1290  ;;  %v1388_v17 = vsel %vm586_vm0, %v1360_v23, 0.0 }
 0x352   : > { %v1327_v35 = vmul.f32 0.03125, %v1291_v60  ;;  %1389 = vadd.xlane.f32.xlu0 %v1388_v17  ;;  %v1282_v7 = vpop.xlane.xlu0 %1281  ;;  %v1361_v62 = vmul.f32 %v3650_v55, %v3650_v55 }
 0x353   : > { %v1324_v63 = vmul.f32 0.03125, %v1282_v7  ;;  %v1358_v37 = vmul.f32 %v3653_v58, %v3653_v58 }
 0x354   : > { %v3661_v2 = vsub.f32 %v3581_v1, %v1327_v35  ;;  %v1391_v31 = vsel %vm586_vm0, %v1361_v62, 0.0 }
 0x355   : > { %v3665_v26 = vsub.f32 %v3583_v43, %v1324_v63  ;;  %1392 = vadd.xlane.f32.xlu1 %v1391_v31  ;;  %v1285_v3 = vpop.xlane.xlu1 %1284  ;;  %v1382_v53 = vsel %vm586_vm0, %v1358_v37, 0.0 }
 0x356   : > { %v1325_v21 = vmul.f32 0.03125, %v1285_v3  ;;  %1383 = vadd.xlane.f32.xlu0 %v1382_v53  ;;  %v1276_v4 = vpop.xlane.xlu0 %1275  ;;  %v1359_v47 = vmul.f32 %v3661_v2, %v3661_v2 }
 0x357   : > { %v1322_v6 = vmul.f32 0.03125, %v1276_v4  ;;  %v1356_v1 = vmul.f32 %v3665_v26, %v3665_v26 }
 0x358   : > { %v3673_v54 = vsub.f32 %v3589_v56, %v1325_v21  ;;  %v1385_v43 = vsel %vm586_vm0, %v1359_v47, 0.0 }
 0x359   : > { %v3677_v15 = vsub.f32 %v3594_v29, %v1322_v6  ;;  %1386 = vadd.xlane.f32.xlu1 %v1385_v43  ;;  %v1279_v18 = vpop.xlane.xlu1 %1278  ;;  %v1376_v11 = vsel %vm586_vm0, %v1356_v1, 0.0 }
 0x35a   : > { %v1323_v27 = vmul.f32 0.03125, %v1279_v18  ;;  %1377 = vadd.xlane.f32.xlu0 %v1376_v11  ;;  %v1318_v30 = vpop.xlane.xlu0 %1317  ;;  %v1357_v32 = vmul.f32 %v3673_v54, %v3673_v54 }
 0x35b   : > { %v1336_v19 = vmul.f32 0.03125, %v1318_v30  ;;  %v1354_v56 = vmul.f32 %v3677_v15, %v3677_v15 }
 0x35c   : > { %v3685_v20 = vsub.f32 %v3602_v51, %v1323_v27  ;;  %v1379_v29 = vsel %vm586_vm0, %v1357_v32, 0.0  ;;  %v2510_v27 = vld [vmem:[%s4101_s9] sm:$0xff]  }
 0x35d   : > { %v3689_v44 = vsub.f32 %v3597_v59, %v1336_v19  ;;  %1380 = vadd.xlane.f32.xlu1 %v1379_v29  ;;  %v1321_v38 = vpop.xlane.xlu1 %1320  ;;  %v1370_v39 = vsel %vm586_vm0, %v1354_v56, 0.0  ;;  %2313 = vmatprep.mubr.msk.bf16.mxu0 %vm1578_vm1, %v2510_v27  ;;  %v3752_v27 = vld [vmem:[#allocation13] ss:$0 sm:$0xff] }
 0x35e   : > { %v1337_v40 = vmul.f32 0.03125, %v1321_v38  ;;  %1371 = vadd.xlane.f32.xlu0 %v1370_v39  ;;  %v1312_v16 = vpop.xlane.xlu0 %1311  ;;  %v1355_v61 = vmul.f32 %v3685_v20, %v3685_v20 }
 0x35f   : > { %v1334_v57 = vmul.f32 0.03125, %v1312_v16  ;;  %v1368_v51 = vmul.f32 %v3689_v44, %v3689_v44 }
 0x360   : > { %v3697_v10 = vsub.f32 %v3606_v42, %v1337_v40  ;;  %v1373_v59 = vsel %vm586_vm0, %v1355_v61, 0.0 }
 0x361   : > { %v3701_v24 = vsub.f32 %v3613_v13, %v1334_v57  ;;  %1374 = vadd.xlane.f32.xlu1 %v1373_v59  ;;  %v1315_v49 = vpop.xlane.xlu1 %1314  ;;  %v1412_v14 = vsel %vm586_vm0, %v1368_v51, 0.0 }
 0x362   : > { %v1335_v36 = vmul.f32 0.03125, %v1315_v49  ;;  %1413 = vadd.xlane.f32.xlu0 %v1412_v14  ;;  %v1306_v52 = vpop.xlane.xlu0 %1305  ;;  %v1369_v0 = vmul.f32 %v3697_v10, %v3697_v10 }
 0x363   : > { %v1332_v23 = vmul.f32 0.03125, %v1306_v52  ;;  %v1366_v42 = vmul.f32 %v3701_v24, %v3701_v24 }
 0x364   : > { %v3709_v60 = vsub.f32 %v3619_v22, %v1335_v36  ;;  %v1415_v13 = vsel %vm586_vm0, %v1369_v0, 0.0 }
 0x365   : > { %v3713_v17 = vsub.f32 %v3623_v34, %v1332_v23  ;;  %1416 = vadd.xlane.f32.xlu1 %v1415_v13  ;;  %v1309_v35 = vpop.xlane.xlu1 %1308  ;;  %v1406_v7 = vsel %vm586_vm0, %v1366_v42, 0.0 }
 0x366   : > { %v1333_v62 = vmul.f32 0.03125, %v1309_v35  ;;  %1407 = vadd.xlane.f32.xlu0 %v1406_v7  ;;  %v1300_v63 = vpop.xlane.xlu0 %1299  ;;  %v1367_v37 = vmul.f32 %v3709_v60, %v3709_v60 }
 0x367   : > { %v1330_v31 = vmul.f32 0.03125, %v1300_v63  ;;  %v1364_v22 = vmul.f32 %v3713_v17, %v3713_v17 }
 0x368   : > { %v3721_v3 = vsub.f32 %v3629_v28, %v1333_v62  ;;  %v1409_v34 = vsel %vm586_vm0, %v1367_v37, 0.0 }
 0x369   : > { %v3725_v53 = vsub.f32 %v3633_v41, %v1330_v31  ;;  %1410 = vadd.xlane.f32.xlu1 %v1409_v34  ;;  %v1303_v21 = vpop.xlane.xlu1 %1302  ;;  %v1400_v4 = vsel %vm586_vm0, %v1364_v22, 0.0  ;;  %v3748_v22 = vld [vmem:[#allocation11] ss:$0 sm:$0xff] }
 0x36a   : > { %v1331_v47 = vmul.f32 0.03125, %v1303_v21  ;;  %1401 = vadd.xlane.f32.xlu0 %v1400_v4  ;;  %v1365_v6 = vmul.f32 %v3721_v3, %v3721_v3 }
 0x36b   : > { %v1362_v1 = vmul.f32 %v3725_v53, %v3725_v53 }
 0x36c   : > { %v3733_v28 = vsub.f32 %v3638_v46, %v1331_v47  ;;  %v1403_v43 = vsel %vm586_vm0, %v1365_v6, 0.0  ;;  %v2514_v46 = vld [vmem:[%s4101_s9 + $0x20] sm:$0xff]  }
 0x36d   : > { %1404 = vadd.xlane.f32.xlu1 %v1403_v43  ;;  %v1394_v41 = vsel %vm586_vm0, %v1362_v1, 0.0  ;;  %2329 = vmatprep.mubr.msk.bf16.mxu1 %vm1578_vm1, %v2514_v46 }
 0x36e   : > { %1395 = vadd.xlane.f32.xlu0 %v1394_v41  ;;  %v1363_v18 = vmul.f32 %v3733_v28, %v3733_v28 }
 0x370   : > { %v1397_v11 = vsel %vm586_vm0, %v1363_v18, 0.0 }
 0x371   : > { %1398 = vadd.xlane.f32.xlu1 %v1397_v11 }
 0x3db   : > { %v1390_v30 = vpop.xlane.xlu0 %1389 }
 0x3dc   : > { %v1424_v32 = vmul.f32 0.03125, %v1390_v30 }
 0x3de   : > { %v1440_v19 = vadd.f32 1e-06, %v1424_v32  ;;  %v1393_v56 = vpop.xlane.xlu1 %1392 }
 0x3df   : > { %v1425_v29 = vmul.f32 0.03125, %v1393_v56  ;;  %v1384_v38 = vpop.xlane.xlu0 %1383 }
 0x3e0   : > { %2584 = vrsqrt.f32 %v1440_v19  ;;  %v1422_v39 = vmul.f32 0.03125, %v1384_v38 }
 0x3e1   : > { %v1441_v40 = vadd.f32 1e-06, %v1425_v29 }
 0x3e2   : > { %v1438_v16 = vadd.f32 1e-06, %v1422_v39  ;;  %v1387_v61 = vpop.xlane.xlu1 %1386 }
 0x3e3   : > { %2586 = vrsqrt.f32 %v1441_v40  ;;  %v1423_v57 = vmul.f32 0.03125, %v1387_v61  ;;  %v1378_v51 = vpop.xlane.xlu0 %1377 }
 0x3e4   : > { %2588 = vrsqrt.f32 %v1438_v16  ;;  %v1420_v59 = vmul.f32 0.03125, %v1378_v51 }
 0x3e5   : > { %v1439_v49 = vadd.f32 1e-06, %v1423_v57 }
 0x3e6   : > { %v1436_v14 = vadd.f32 1e-06, %v1420_v59  ;;  %v1381_v36 = vpop.xlane.xlu1 %1380 }
 0x3e7   : > { %2590 = vrsqrt.f32 %v1439_v49  ;;  %v1421_v52 = vmul.f32 0.03125, %v1381_v36  ;;  %v1372_v0 = vpop.xlane.xlu0 %1371 }
 0x3e8   : > { %2592 = vrsqrt.f32 %v1436_v14  ;;  %v1418_v23 = vmul.f32 0.03125, %v1372_v0 }
 0x3e9   : > { %v1437_v42 = vadd.f32 1e-06, %v1421_v52 }
 0x3ea   : > { %v1434_v13 = vadd.f32 1e-06, %v1418_v23  ;;  %v1375_v35 = vpop.xlane.xlu1 %1374 }
 0x3eb   : > { %2594 = vrsqrt.f32 %v1437_v42  ;;  %v1419_v7 = vmul.f32 0.03125, %v1375_v35  ;;  %v1414_v62 = vpop.xlane.xlu0 %1413 }
 0x3ec   : > { %2596 = vrsqrt.f32 %v1434_v13  ;;  %v1432_v63 = vmul.f32 0.03125, %v1414_v62 }
 0x3ed   : > { %v2585_v37 = vpop.eup %2584  ;;  %v1435_v31 = vadd.f32 1e-06, %v1419_v7 }
 0x3ee   : > { %v1448_v34 = vadd.f32 1e-06, %v1432_v63  ;;  %v1417_v21 = vpop.xlane.xlu1 %1416  ;;  %v1472_v4 = vmul.f32 %v2585_v37, %v3645_v50 }
 0x3ef   : > { %2598 = vrsqrt.f32 %v1435_v31  ;;  %v1433_v47 = vmul.f32 0.03125, %v1417_v21  ;;  %v1408_v6 = vpop.xlane.xlu0 %1407 }
 0x3f0   : > { %v2587_v1 = vpop.eup %2586  ;;  %2600 = vrsqrt.f32 %v1448_v34  ;;  %v1430_v43 = vmul.f32 0.03125, %v1408_v6  ;;  %v1494_v41 = vmul.f32 %v3748_v22, %v1472_v4 }
 0x3f1   : > { %v2589_v18 = vpop.eup %2588  ;;  %v1449_v11 = vadd.f32 1e-06, %v1433_v47  ;;  %v1473_v46 = vmul.f32 %v2587_v1, %v3650_v55 }
 0x3f2   : > { %v1446_v30 = vadd.f32 1e-06, %v1430_v43  ;;  %v1411_v32 = vpop.xlane.xlu1 %1410  ;;  %v1470_v19 = vmul.f32 %v2589_v18, %v3653_v58  ;;  %v1516_v40 = vadd.f32 %v3752_v27, %v1494_v41 }
 0x3f3   : > { %2602 = vrsqrt.f32 %v1449_v11  ;;  %v1431_v50 = vmul.f32 0.03125, %v1411_v32  ;;  %v1402_v56 = vpop.xlane.xlu0 %1401  ;;  %v1495_v29 = vmul.f32 %v3748_v22, %v1473_v46 }
 0x3f4   : > { %v2591_v38 = vpop.eup %2590  ;;  %2604 = vrsqrt.f32 %v1446_v30  ;;  %v1428_v39 = vmul.f32 0.03125, %v1402_v56  ;;  %v1492_v51 = vmul.f32 %v3748_v22, %v1470_v19 }
 0x3f5   : > { %v2593_v16 = vpop.eup %2592  ;;  %v1447_v61 = vadd.f32 1e-06, %v1431_v50  ;;  %v1517_v57 = vadd.f32 %v3752_v27, %v1495_v29  ;;  %v1471_v55 = vmul.f32 %v2591_v38, %v3661_v2 }
 0x3f6   : > { %v1444_v59 = vadd.f32 1e-06, %v1428_v39  ;;  %v1405_v58 = vpop.xlane.xlu1 %1404  ;;  %v1468_v49 = vmul.f32 %v2593_v16, %v3665_v26  ;;  %v1514_v2 = vadd.f32 %v3752_v27, %v1492_v51 }
 0x3f7   : > { %2606 = vrsqrt.f32 %v1447_v61  ;;  %v1429_v14 = vmul.f32 0.03125, %v1405_v58  ;;  %v1396_v36 = vpop.xlane.xlu0 %1395  ;;  %v1529_v52 = vpack.c.bf16 %v1517_v57, %v1516_v40  ;;  %v1493_v0 = vmul.f32 %v3748_v22, %v1471_v55  ;;  %v2511_v61 = vld [vmem:[%s4101_s9 + $0x8] sm:$0xff]  }
 0x3f8   : > { %v2595_v23 = vpop.eup %2594  ;;  %2608 = vrsqrt.f32 %v1444_v59  ;;  %v1426_v42 = vmul.f32 0.03125, %v1396_v36  ;;  %v1490_v13 = vmul.f32 %v3748_v22, %v1468_v49 }
 0x3f9   : > { %v2597_v35 = vpop.eup %2596  ;;  %v1445_v7 = vadd.f32 1e-06, %v1429_v14  ;;  %2305 = vmatprep.subr.bf16.mxu0 %v1529_v52  ;;  %v1515_v62 = vadd.f32 %v3752_v27, %v1493_v0  ;;  %v1469_v26 = vmul.f32 %v2595_v23, %v3673_v54 }
 0x3fa   : > { %v1442_v63 = vadd.f32 1e-06, %v1426_v42  ;;  %v1399_v37 = vpop.xlane.xlu1 %1398  ;;  %2306 = vmatpush3.bf16.msra.mxu0 %v1529_v52  ;;  %v1466_v31 = vmul.f32 %v2597_v35, %v3677_v15  ;;  %v1512_v6 = vadd.f32 %v3752_v27, %v1490_v13  ;;  %v2513_v35 = vld [vmem:[%s4101_s9 + $0x18] sm:$0xff]  }
 0x3fb   : > { %2610 = vrsqrt.f32 %v1445_v7  ;;  %v1427_v34 = vmul.f32 0.03125, %v1399_v37  ;;  %v1528_v21 = vpack.c.bf16 %v1515_v62, %v1514_v2  ;;  %v1491_v4 = vmul.f32 %v3748_v22, %v1469_v26 }
 0x3fc   : > { %v2599_v47 = vpop.eup %2598  ;;  %2612 = vrsqrt.f32 %v1442_v63  ;;  %v1488_v18 = vmul.f32 %v3748_v22, %v1466_v31 }
 0x3fd   : > { %v2601_v1 = vpop.eup %2600  ;;  %v1443_v43 = vadd.f32 1e-06, %v1427_v34  ;;  %2307 = vmatprep.subr.bf16.mxu0 %v1528_v21  ;;  %v1513_v41 = vadd.f32 %v3752_v27, %v1491_v4  ;;  %v1467_v54 = vmul.f32 %v2599_v47, %v3685_v20  ;;  %v2516_v34 = vld [vmem:[%s4101_s9 + $0x30] sm:$0xff]   ;;  %v2271_v4 = vpop.f32.mrf.mxu0 }
 0x3fe   : > { %2308 = vmatpush3.bf16.msra.mxu0 %v1528_v21  ;;  %v1480_v15 = vmul.f32 %v2601_v1, %v3689_v44  ;;  %v1510_v19 = vadd.f32 %v3752_v27, %v1488_v18  ;;  %v2519_v21 = vld [vmem:[%s4103_s11] sm:$0xff]  }
 0x3ff   : > { %2614 = vrsqrt.f32 %v1443_v43  ;;  %v1527_v11 = vpack.c.bf16 %v1513_v41, %v1512_v6  ;;  %v1489_v46 = vmul.f32 %v3748_v22, %v1467_v54  ;;  %v929_v47 = vpop.f32.mrf.mxu0  ;;  %v2163_v41 = vld [vmem:[#allocation8] ss:$0 sm:$0xff] }
 0x400   : > { %v2603_v30 = vpop.eup %2602  ;;  %v1502_v20 = vmul.f32 %v3748_v22, %v1480_v15  ;;  %v930_v18 = vadd.f32 %v2163_v41, %v929_v47 }
 0x401   : > { %v2605_v32 = vpop.eup %2604  ;;  %2309 = vmatprep.subr.bf16.mxu0 %v1527_v11  ;;  %v1511_v50 = vadd.f32 %v3752_v27, %v1489_v46  ;;  %v1481_v56 = vmul.f32 %v2603_v30, %v3697_v10  ;;  %v2272_v6 = vpop.f32.mrf.mxu0  ;;  %v3832_v46 = vadd.f32 %v2271_v4, %v2163_v41 }
 0x402   : > { %2310 = vmatpush3.bf16.msra.mxu0 %v1527_v11  ;;  %v1478_v29 = vmul.f32 %v2605_v32, %v3701_v24  ;;  %v1524_v57 = vadd.f32 %v3752_v27, %v1502_v20  ;;  %v2512_v24 = vld [vmem:[%s4101_s9 + $0x10] sm:$0xff]   ;;  %v941_v15 = vadd.f32 %v2272_v6, %v2163_v41  ;;  %v1128_v32 = vmul.f32 0.70710677, %v930_v18 }
 0x403   : > { %v1526_v38 = vpack.c.bf16 %v1511_v50, %v1510_v19  ;;  %v1503_v44 = vmul.f32 %v3748_v22, %v1481_v56  ;;  %v932_v1 = vpop.f32.mrf.mxu0  ;;  %v1130_v56 = vmul.f32 0.70710677, %v3832_v46 }
 0x404   : > { %v2607_v39 = vpop.eup %2606  ;;  %v1500_v40 = vmul.f32 %v3748_v22, %v1478_v29  ;;  %v3830_v11 = vadd.f32 %v2163_v41, %v932_v1  ;;  %v1131_v19 = vmul.f32 0.70710677, %v941_v15  ;;  %2616 = verf.f32 %v1128_v32 }
 0x405   : > { %v2609_v16 = vpop.eup %2608  ;;  %2311 = vmatprep.subr.bf16.mxu0 %v1526_v38  ;;  %v1525_v10 = vadd.f32 %v3752_v27, %v1503_v44  ;;  %v1479_v55 = vmul.f32 %v2607_v39, %v3709_v60  ;;  %v2275_v43 = vpop.f32.mrf.mxu0  ;;  %v1114_v1 = vmul.f32 0.5, %v3832_v46 }
 0x406   : > { %2312 = vmatpush3.bf16.msra.mxu0 %v1526_v38  ;;  %v1476_v51 = vmul.f32 %v2609_v16, %v3713_v17  ;;  %v1522_v14 = vadd.f32 %v3752_v27, %v1500_v40  ;;  %v1129_v50 = vmul.f32 0.70710677, %v3830_v11  ;;  %2618 = verf.f32 %v1131_v19  ;;  %v3914_v19 = vld [vmem:[%s4102_s10 + $0x30] sm:$0xff] }
 0x407   : > { %v1533_v59 = vpack.c.bf16 %v1525_v10, %v1524_v57  ;;  %v1501_v58 = vmul.f32 %v3748_v22, %v1479_v55  ;;  %v945_v54 = vpop.f32.mrf.mxu0  ;;  %v3842_v39 = vadd.f32 %v2275_v43, %v2163_v41  ;;  %v3846_v16 = vadd.f32 %v3498_v25, %v2163_v41 }
 0x408   : > { %v2611_v49 = vpop.eup %2610  ;;  %v1498_v0 = vmul.f32 %v3748_v22, %v1476_v51  ;;  %v3836_v29 = vadd.f32 %v2163_v41, %v945_v54  ;;  %2620 = verf.f32 %v1129_v50  ;;  %v3850_v57 = vadd.f32 %v2163_v41, %v3500_v33 }
 0x409   : > { %v2613_v36 = vpop.eup %2612  ;;  %2314 = vmatmul.mubr.msk.bf16.vlgmr.msra.gmra.mxu0 %vm1578_vm1, %v2511_v61  ;;  %2321 = vmatprep.subr.bf16.mxu1 %v1533_v59  ;;  %v1523_v52 = vadd.f32 %v3752_v27, %v1501_v58  ;;  %v1477_v60 = vmul.f32 %v2611_v49, %v3721_v3  ;;  %v2276_v30 = vpop.f32.mrf.mxu0  ;;  %2622 = verf.f32 %v1130_v56  ;;  %v3854_v55 = vadd.f32 %v3502_v48, %v2163_v41 }
 0x40a   : > { %2322 = vmatpush3.bf16.msra.mxu1 %v1533_v59  ;;  %2317 = vmatprep.mubr.msk.bf16.mxu0 %vm1578_vm1, %v2512_v24  ;;  %v1474_v17 = vmul.f32 %v2613_v36, %v3725_v53  ;;  %v1520_v7 = vadd.f32 %v3752_v27, %v1498_v0  ;;  %v3838_v38 = vadd.f32 %v2276_v30, %v2163_v41  ;;  %v1132_v40 = vmul.f32 0.70710677, %v3836_v29 }
 0x40b   : > { %v1532_v23 = vpack.c.bf16 %v1523_v52, %v1522_v14  ;;  %v1499_v42 = vmul.f32 %v3748_v22, %v1477_v60  ;;  %v948_v20 = vpop.f32.mrf.mxu0  ;;  %v1134_v24 = vmul.f32 0.70710677, %v3842_v39  ;;  %v3858_v51 = vadd.f32 %v2163_v41, %v3504_v8  ;;  %v3870_v8 = vld [vmem:[%s4102_s10] sm:$0xff]  ;;  %v3878_v60 = vld [vmem:[%s4102_s10 + $0x10] sm:$0xff] }
 0x40c   : > { %v2615_v13 = vpop.eup %2614  ;;  %v1496_v62 = vmul.f32 %v3748_v22, %v1474_v17  ;;  %v3840_v44 = vadd.f32 %v2163_v41, %v948_v20  ;;  %v1135_v61 = vmul.f32 0.70710677, %v3838_v38  ;;  %2624 = verf.f32 %v1132_v40  ;;  %v3919_v40 = vld [vmem:[%s4102_s10 + $0x38] sm:$0xff] }
 0x40d   : > { %2323 = vmatprep.subr.bf16.mxu1 %v1532_v23  ;;  %v1521_v3 = vadd.f32 %v3752_v27, %v1499_v42  ;;  %v1475_v2 = vmul.f32 %v2615_v13, %v3733_v28  ;;  %v2515_v28 = vld [vmem:[%s4101_s9 + $0x28] sm:$0xff]   ;;  %v1138_v59 = vmul.f32 0.70710677, %v3846_v16  ;;  %v1136_v25 = vmul.f32 0.70710677, %v3850_v57 }
 0x40e   : > { %2324 = vmatpush3.bf16.msra.mxu1 %v1532_v23  ;;  %v1518_v63 = vadd.f32 %v3752_v27, %v1496_v62  ;;  %v1133_v10 = vmul.f32 0.70710677, %v3840_v44  ;;  %2626 = verf.f32 %v1135_v61  ;;  %v1139_v33 = vmul.f32 0.70710677, %v3854_v55  ;;  %v3886_v23 = vld [vmem:[%s4102_s10 + $0x18] sm:$0xff] }
 0x40f   : > { %v1531_v26 = vpack.c.bf16 %v1521_v3, %v1520_v7  ;;  %v1497_v53 = vmul.f32 %v3748_v22, %v1475_v2  ;;  %v2517_v22 = vld [vmem:[%s4101_s9 + $0x38] sm:$0xff]   ;;  %v1137_v58 = vmul.f32 0.70710677, %v3858_v51  ;;  %v3865_v48 = vadd.f32 %v3506_v9, %v2163_v41  ;;  %v3897_v2 = vld [vmem:[%s4102_s10 + $0x8] sm:$0xff] }
 0x410   : > { %2628 = verf.f32 %v1133_v10  ;;  %v3873_v52 = vadd.f32 %v2163_v41, %v3508_v12  ;;  %v3881_v9 = vadd.f32 %v3510_v5, %v2163_v41 }
 0x411   : > { %2318 = vmatmul.mubr.msk.bf16.gmra.mxu0 %vm1578_vm1, %v2513_v35  ;;  %2325 = vmatprep.subr.bf16.mxu1 %v1531_v26  ;;  %v1519_v37 = vadd.f32 %v3752_v27, %v1497_v53  ;;  %v2518_v27 = vld [vmem:[%s4103_s11 + $0x8] sm:$0xff]   ;;  %2630 = verf.f32 %v1134_v24  ;;  %v2617_v49 = vpop.eup %2616  ;;  %v1142_v13 = vmul.f32 0.70710677, %v3865_v48  ;;  %v3891_v35 = vadd.f32 %v2163_v41, %v3512_v45 }
 0x412   : > { %2326 = vmatpush3.bf16.msra.mxu1 %v1531_v26  ;;  %2337 = vmatprep.subr.bf16.mxu0 %v2518_v27  ;;  %2632 = verf.f32 %v1138_v59  ;;  %v1140_v62 = vmul.f32 0.70710677, %v3873_v52  ;;  %v1160_v26 = vadd.f32 1.0, %v2617_v49  ;;  %v1112_v45 = vmul.f32 0.5, %v930_v18  ;;  %v3909_v18 = vld [vmem:[%s4102_s10 + $0x20] sm:$0xff] }
 0x413   : > { %v1530_v31 = vpack.c.bf16 %v1519_v37, %v1518_v63  ;;  %2338 = vmatpush3.bf16.msra.mxu0 %v2518_v27  ;;  %v2619_v36 = vpop.eup %2618  ;;  %2634 = verf.f32 %v1136_v25  ;;  %v1143_v37 = vmul.f32 0.70710677, %v3881_v9  ;;  %v1141_v6 = vmul.f32 0.70710677, %v3891_v35 }
 0x414   : > { %2339 = vmatprep.subr.bf16.mxu0 %v2519_v21  ;;  %2636 = verf.f32 %v1139_v33  ;;  %v1163_v7 = vadd.f32 1.0, %v2619_v36 }
 0x415   : > { %2327 = vmatprep.subr.bf16.mxu1 %v1530_v31  ;;  %v2621_v0 = vpop.eup %2620  ;;  %2638 = verf.f32 %v1137_v58 }
 0x416   : > { %2328 = vmatpush3.bf16.msra.mxu1 %v1530_v31  ;;  %v2623_v42 = vpop.eup %2622  ;;  %v1161_v53 = vadd.f32 1.0, %v2621_v0  ;;  %2640 = verf.f32 %v1142_v13 }
 0x417   : > { %2340 = vmatpush3.bf16.msra.mxu0 %v2519_v21  ;;  %v1162_v31 = vadd.f32 1.0, %v2623_v42  ;;  %2642 = verf.f32 %v1143_v37 }
 0x418   : > { %2644 = verf.f32 %v1140_v62 }
 0x419   : > { %2330 = vmatmul.mubr.msk.bf16.vlgmr.msra.gmra.mxu1 %vm1578_vm1, %v2515_v28  ;;  %v1115_v28 = vmul.f32 0.5, %v941_v15  ;;  %v2625_v47 = vpop.eup %2624  ;;  %v1178_v46 = vmul.f32 %v1162_v31, %v1114_v1  ;;  %2646 = verf.f32 %v1141_v6 }
 0x41a   : > { %2333 = vmatprep.mubr.msk.bf16.mxu1 %vm1578_vm1, %v2516_v34  ;;  %v1164_v0 = vadd.f32 1.0, %v2625_v47 }
 0x41b   : > { %v1179_v43 = vmul.f32 %v1163_v7, %v1115_v28  ;;  %v2627_v15 = vpop.eup %2626 }
 0x41c   : > { %v1167_v25 = vadd.f32 1.0, %v2627_v15 }
 0x41d   : > { %v2629_v50 = vpop.eup %2628 }
 0x41e   : > { %v2631_v61 = vpop.eup %2630 }
 0x41f   : > { %v2633_v36 = vpop.eup %2632  ;;  %v1166_v7 = vadd.f32 1.0, %v2631_v61 }
 0x420   : > { %v2635_v13 = vpop.eup %2634 }
 0x421   : > { %2334 = vmatmul.mubr.msk.bf16.gmra.mxu1 %vm1578_vm1, %v2517_v22  ;;  %v1113_v22 = vmul.f32 0.5, %v3830_v11  ;;  %v1176_v11 = vmul.f32 %v1160_v26, %v1112_v45 }
 0x423   : > { %v1177_v30 = vmul.f32 %v1161_v53, %v1113_v22  ;;  %v2637_v53 = vpop.eup %2636 }
 0x424   : > { %v2639_v28 = vpop.eup %2638 }
 0x4c9   : > { %v2315_v14 = vpop.f32.mrf.mxu0 }
 0x4ca   : > { %v1634_v3 = vadd.f32 %v2315_v14, %v3878_v60  ;;  %v3926_v14 = vld [vmem:[%s4102_s10 + $0x28] sm:$0xff] }
 0x4cb   : > { %v1625_v17 = vpop.f32.mrf.mxu0 }
 0x4cc   : > { %v1626_v12 = vadd.f32 %v1625_v17, %v3870_v8  ;;  %v1755_v41 = vadd.f32 1.0, %v1634_v3  ;;  %v1165_v17 = vadd.f32 1.0, %v2629_v50  ;;  %v1116_v3 = vmul.f32 0.5, %v3836_v29 }
 0x4cd   : > { %v2316_v5 = vpop.f32.mrf.mxu0 }
 0x4ce   : > { %v1637_v63 = vadd.f32 %v2316_v5, %v3886_v23  ;;  %v1753_v27 = vadd.f32 1.0, %v1626_v12  ;;  %v1771_v33 = vmul.f32 %v1755_v41, %v1178_v46  ;;  %v1119_v5 = vmul.f32 0.5, %v3838_v38 }
 0x4cf   : > { %v1628_v34 = vpop.f32.mrf.mxu0  ;;  %v1180_v29 = vmul.f32 %v1164_v0, %v1116_v3  ;;  %v1171_v41 = vadd.f32 1.0, %v2637_v53 }
 0x4d0   : > { %v1756_v21 = vadd.f32 1.0, %v1637_v63  ;;  %v1629_v4 = vadd.f32 %v1628_v34, %v3897_v2  ;;  %v1769_v10 = vmul.f32 %v1753_v27, %v1176_v11  ;;  %v1117_v63 = vmul.f32 0.5, %v3840_v44 }
 0x4d1   : > { %v2319_v54 = vpop.f32.mrf.mxu0  ;;  %v1118_v34 = vmul.f32 0.5, %v3842_v39  ;;  %v1183_v22 = vmul.f32 %v1167_v25, %v1119_v5  ;;  %v1170_v44 = vadd.f32 1.0, %v2633_v36  ;;  %v1122_v39 = vmul.f32 0.5, %v3846_v16 }
 0x4d2   : > { %v1754_v32 = vadd.f32 1.0, %v1629_v4  ;;  %v1772_v56 = vmul.f32 %v1756_v21, %v1179_v43  ;;  %v1650_v58 = vadd.f32 %v2319_v54, %v3914_v19  ;;  %v1181_v38 = vmul.f32 %v1165_v17, %v1117_v63 }
 0x4d3   : > { %v1641_v20 = vpop.f32.mrf.mxu0  ;;  %v1182_v6 = vmul.f32 %v1166_v7, %v1118_v34  ;;  %v1121_v25 = vmul.f32 0.5, %v3858_v51 }
 0x4d4   : > { %v1770_v24 = vmul.f32 %v1754_v32, %v1177_v30  ;;  %v1642_v59 = vadd.f32 %v1641_v20, %v3909_v18  ;;  %v1786_v62 = vpack.c.bf16 %v1772_v56, %v1771_v33  ;;  %v1759_v27 = vadd.f32 1.0, %v1650_v58 }
 0x4d5   : > { %v2320_v49 = vpop.f32.mrf.mxu0  ;;  %v1168_v30 = vadd.f32 1.0, %v2635_v13  ;;  %v1169_v32 = vadd.f32 1.0, %v2639_v28  ;;  %v1123_v56 = vmul.f32 0.5, %v3854_v55 }
 0x4d6   : > { %v1785_v42 = vpack.c.bf16 %v1770_v24, %v1769_v10  ;;  %v1653_v12 = vadd.f32 %v2320_v49, %v3919_v40  ;;  %v1757_v37 = vadd.f32 1.0, %v1642_v59  ;;  %v1775_v50 = vmul.f32 %v1759_v27, %v1182_v6  ;;  %v2641_v10 = vpop.eup %2640 }
 0x4d7   : > { %v1644_v26 = vpop.f32.mrf.mxu0  ;;  %v1186_v24 = vmul.f32 %v1170_v44, %v1122_v39  ;;  %v1120_v59 = vmul.f32 0.5, %v3850_v57  ;;  %v2643_v58 = vpop.eup %2642  ;;  %v1187_v16 = vmul.f32 %v1171_v41, %v1123_v56  ;;  %v1174_v3 = vadd.f32 1.0, %v2641_v10  ;;  %v2649_v56 = vld [vmem:[%s3228_s24] sm:$0xff]  ;;  %v2650_v10 = vld [vmem:[%s3228_s24 + $0x18] sm:$0xff] }
 0x4d8   : > { %v1760_v31 = vadd.f32 1.0, %v1653_v12  ;;  %v1645_v45 = vadd.f32 %v1644_v26, %v3926_v14  ;;  %2341 = vmatprep.mubr.msk.bf16.mxu0 %vm586_vm0, %v1785_v42  ;;  %v1773_v54 = vmul.f32 %v1757_v37, %v1180_v29  ;;  %v2645_v55 = vpop.eup %2644  ;;  %v1185_v42 = vmul.f32 %v1169_v32, %v1121_v25 }
 0x4d9   : > { %v2331_v21 = vpop.f32.mrf.mxu1  ;;  %2342 = vmatmul.mubr.msk.bf16.vlgmr.msra.gmra.mxu0 %vm586_vm0, %v1786_v62  ;;  %v1184_v17 = vmul.f32 %v1168_v30, %v1120_v59  ;;  %v2647_v12 = vpop.eup %2646  ;;  %v1175_v5 = vadd.f32 1.0, %v2643_v58  ;;  %v1126_v37 = vmul.f32 0.5, %v3865_v48  ;;  %v1124_v29 = vmul.f32 0.5, %v3873_v52  ;;  %v2648_v30 = vld [vmem:[%s3228_s24 + $0x10] sm:$0xff] }
 0x4da   : > { %v1758_v4 = vadd.f32 1.0, %v1645_v45  ;;  %v1731_v47 = vadd.f32 %v2331_v21, %v3878_v60  ;;  %v1776_v1 = vmul.f32 %v1760_v31, %v1183_v22  ;;  %v1172_v31 = vadd.f32 1.0, %v2645_v55 }
 0x4db   : > { %v1722_v43 = vpop.f32.mrf.mxu1  ;;  %v1127_v45 = vmul.f32 0.5, %v3881_v9  ;;  %v1173_v34 = vadd.f32 1.0, %v2647_v12 }
 0x4dc   : > { %v1774_v15 = vmul.f32 %v1758_v4, %v1181_v38  ;;  %v1723_v11 = vadd.f32 %v1722_v43, %v3870_v8  ;;  %v1763_v61 = vadd.f32 1.0, %v1731_v47  ;;  %v1788_v33 = vpack.c.bf16 %v1776_v1, %v1775_v50 }
 0x4dd   : > { %v2332_v46 = vpop.f32.mrf.mxu1  ;;  %v1125_v38 = vmul.f32 0.5, %v3891_v35  ;;  %v1191_v47 = vmul.f32 %v1175_v5, %v1127_v45  ;;  %v1188_v9 = vmul.f32 %v1172_v31, %v1124_v29  ;;  %v2657_v31 = vld [vmem:[%s3228_s24 + $0x40] sm:$0xff]  ;;  %v2659_v29 = vld [vmem:[%s3228_s24 + $0x48] sm:$0xff] }
 0x4de   : > { %v1787_v20 = vpack.c.bf16 %v1774_v15, %v1773_v54  ;;  %v1734_v60 = vadd.f32 %v2332_v46, %v3886_v23  ;;  %v1761_v49 = vadd.f32 1.0, %v1723_v11  ;;  %v1779_v57 = vmul.f32 %v1763_v61, %v1186_v24 }
 0x4df   : > { %v1725_v8 = vpop.f32.mrf.mxu1  ;;  %v1189_v6 = vmul.f32 %v1173_v34, %v1125_v38 }
 0x4e0   : > { %v1764_v36 = vadd.f32 1.0, %v1734_v60  ;;  %v1726_v0 = vadd.f32 %v1725_v8, %v3897_v2  ;;  %2345 = vmatprep.mubr.msk.bf16.mxu0 %vm586_vm0, %v1787_v20  ;;  %v1777_v26 = vmul.f32 %v1761_v49, %v1184_v17  ;;  %v2652_v49 = vld [vmem:[%s3228_s24 + $0x30] sm:$0xff]  ;;  %v2653_v17 = vld [vmem:[%s3228_s24 + $0x20] sm:$0xff] }
 0x4e1   : > { %v2335_v23 = vpop.f32.mrf.mxu1  ;;  %2346 = vmatmul.mubr.msk.bf16.gmra.mxu0 %vm586_vm0, %v1788_v33  ;;  %v2651_v33 = vld [vmem:[%s3228_s24 + $0x8] sm:$0xff] }
 0x4e2   : > { %v1780_v13 = vmul.f32 %v1764_v36, %v1187_v16  ;;  %v1762_v51 = vadd.f32 1.0, %v1726_v0  ;;  %v1747_v7 = vadd.f32 %v2335_v23, %v3914_v19  ;;  %v1190_v19 = vmul.f32 %v1174_v3, %v1126_v37  ;;  %v2655_v3 = vld [vmem:[%s3228_s24 + $0x28] sm:$0xff] }
 0x4e3   : > { %v1738_v62 = vpop.f32.mrf.mxu1 }
 0x4e4   : > { %v1790_v53 = vpack.c.bf16 %v1780_v13, %v1779_v57  ;;  %v1778_v2 = vmul.f32 %v1762_v51, %v1185_v42  ;;  %v1739_v63 = vadd.f32 %v1738_v62, %v3909_v18  ;;  %v1767_v27 = vadd.f32 1.0, %v1747_v7  ;;  %v2654_v57 = vld [vmem:[%s3228_s24 + $0x38] sm:$0xff] }
 0x4e5   : > { %v2336_v28 = vpop.f32.mrf.mxu1 }
 0x4e6   : > { %v1789_v22 = vpack.c.bf16 %v1778_v2, %v1777_v26  ;;  %v1750_v21 = vadd.f32 %v2336_v28, %v3919_v40  ;;  %v1765_v44 = vadd.f32 1.0, %v1739_v63  ;;  %v1783_v1 = vmul.f32 %v1767_v27, %v1190_v19 }
 0x4e7   : > { %v1741_v4 = vpop.f32.mrf.mxu1 }
 0x4e8   : > { %v1768_v18 = vadd.f32 1.0, %v1750_v21  ;;  %v1742_v48 = vadd.f32 %v1741_v4, %v3926_v14  ;;  %2349 = vmatprep.mubr.msk.bf16.mxu0 %vm586_vm0, %v1789_v22  ;;  %v1781_v52 = vmul.f32 %v1765_v44, %v1188_v9  ;;  %v3961_v14 = vld [vmem:[%s4149_s17] ss:$0 sm:$0xff]  ;;  %v2658_v22 = vld [vmem:[%s3228_s24 + $0x58] sm:$0xff]  ;;  %v2660_v44 = vld [vmem:[%s3228_s24 + $0x70] sm:$0xff]  ;;  %s2852_s17 = sshll.u32 %s2968_s25, 4  ;;  %s2853_s17 = int_to_ptr.vmem [resolvable:$false] %s2852_s17 }
 0x4e9   : > { %2350 = vmatmul.mubr.msk.bf16.gmra.mxu0 %vm586_vm0, %v1790_v53  ;;  %v2656_v53 = vld [vmem:[%s3228_s24 + $0x50] sm:$0xff]  ;;  %s2854_s28 = scalar_lea.vmem %s2853_s17, 4096  ;;  %p2855_p12 = scmp.lt.s32.totalorder %s4029_s12, %s2853_s17 }
 0x4ea   : > { %v1784_v40 = vmul.f32 %v1768_v18, %v1191_v47  ;;  %v1766_v43 = vadd.f32 1.0, %v1742_v48  ;;  %p2856_p13 = scmp.lt.s32.totalorder %s2854_s28, %s2848_s16 }
 0x4ec   : > { %v1792_v35 = vpack.c.bf16 %v1784_v40, %v1783_v1  ;;  %v1782_v41 = vmul.f32 %v1766_v43, %v1189_v6  ;;  %v2661_v6 = vld [vmem:[%s3228_s24 + $0x60] sm:$0xff]  ;;  %p2857_p5 = por %p2856_p13, %p2855_p12 }
 0x4ee   : > { %v1791_v54 = vpack.c.bf16 %v1782_v41, %v1781_v52  ;;  %v2662_v52 = vld [vmem:[%s3228_s24 + $0x78] sm:$0xff]  ;;  %p2858_p2 = pnand %p2857_p5, %p2851_p1 }
 0x4f0   : > { %2353 = vmatprep.mubr.msk.bf16.mxu0 %vm586_vm0, %v1791_v54  ;;  %v2663_v54 = vld [vmem:[%s3228_s24 + $0x68] sm:$0xff] }
 0x4f1   : > { %2354 = vmatmul.mubr.msk.bf16.gmra.mxu0 %vm586_vm0, %v1792_v35 }
 0x599   : > { %v2343_v15 = vpop.f32.mrf.mxu0 }
 0x59a   : > { %v1883_v11 = vadd.f32 %v2343_v15, %v3961_v14 }
 0x59b   : > { %v1874_v39 = vpop.f32.mrf.mxu0 }
 0x59c   : > { %v1939_v32 = vadd.f32 %v2648_v30, %v1883_v11  ;;  %v1875_v50 = vadd.f32 %v3961_v14, %v1874_v39 }
 0x59d   : > { %v2344_v46 = vpop.f32.mrf.mxu0 }
 0x59e   : > { %1955 = vst.msk [vmem:[%s3968_s18 + $0x10] sm:$0xff] %vm586_vm0, %v1939_v32  ;;  %v1937_v20 = vadd.f32 %v2649_v56, %v1875_v50  ;;  %v1886_v61 = vadd.f32 %v2344_v46, %v3961_v14 }
 0x59f   : > { %v1877_v60 = vpop.f32.mrf.mxu0 }
 0x5a0   : > { %1953 = vst.msk [vmem:[%s3968_s18] sm:$0xff] %vm586_vm0, %v1937_v20  ;;  %v1940_v24 = vadd.f32 %v2650_v10, %v1886_v61  ;;  %v1878_v59 = vadd.f32 %v3961_v14, %v1877_v60 }
 0x5a1   : > { %v2347_v25 = vpop.f32.mrf.mxu0 }
 0x5a2   : > { %1956 = vst.msk [vmem:[%s3968_s18 + $0x18] sm:$0xff] %vm586_vm0, %v1940_v24  ;;  %v1938_v8 = vadd.f32 %v2651_v33, %v1878_v59  ;;  %v1899_v58 = vadd.f32 %v2347_v25, %v3961_v14 }
 0x5a3   : > { %v1890_v16 = vpop.f32.mrf.mxu0 }
 0x5a4   : > { %1954 = vst.msk [vmem:[%s3968_s18 + $0x8] sm:$0xff] %vm586_vm0, %v1938_v8  ;;  %v1943_v36 = vadd.f32 %v2652_v49, %v1899_v58  ;;  %v1891_v0 = vadd.f32 %v3961_v14, %v1890_v16 }
 0x5a5   : > { %v2348_v55 = vpop.f32.mrf.mxu0 }
 0x5a6   : > { %1959 = vst.msk [vmem:[%s3968_s18 + $0x30] sm:$0xff] %vm586_vm0, %v1943_v36  ;;  %v1941_v42 = vadd.f32 %v2653_v17, %v1891_v0  ;;  %v1902_v23 = vadd.f32 %v2348_v55, %v3961_v14 }
 0x5a7   : > { %v1893_v12 = vpop.f32.mrf.mxu0 }
 0x5a8   : > { %1957 = vst.msk [vmem:[%s3968_s18 + $0x20] sm:$0xff] %vm586_vm0, %v1941_v42  ;;  %v1944_v13 = vadd.f32 %v2654_v57, %v1902_v23  ;;  %v1894_v51 = vadd.f32 %v3961_v14, %v1893_v12 }
 0x5a9   : > { %v2351_v7 = vpop.f32.mrf.mxu0 }
 0x5aa   : > { %1960 = vst.msk [vmem:[%s3968_s18 + $0x38] sm:$0xff] %vm586_vm0, %v1944_v13  ;;  %v1942_v5 = vadd.f32 %v2655_v3, %v1894_v51  ;;  %v1915_v62 = vadd.f32 %v2351_v7, %v3961_v14 }
 0x5ab   : > { %v1906_v26 = vpop.f32.mrf.mxu0 }
 0x5ac   : > { %1958 = vst.msk [vmem:[%s3968_s18 + $0x28] sm:$0xff] %vm586_vm0, %v1942_v5  ;;  %v1947_v2 = vadd.f32 %v2656_v53, %v1915_v62  ;;  %v1907_v63 = vadd.f32 %v3961_v14, %v1906_v26 }
 0x5ad   : > { %v2352_v37 = vpop.f32.mrf.mxu0 }
 0x5ae   : > { %1963 = vst.msk [vmem:[%s3968_s18 + $0x50] sm:$0xff] %vm586_vm0, %v1947_v2  ;;  %v1945_v45 = vadd.f32 %v2657_v31, %v1907_v63  ;;  %v1918_v28 = vadd.f32 %v2352_v37, %v3961_v14 }
 0x5af   : > { %v1909_v34 = vpop.f32.mrf.mxu0 }
 0x5b0   : > { %1961 = vst.msk [vmem:[%s3968_s18 + $0x40] sm:$0xff] %vm586_vm0, %v1945_v45  ;;  %v1948_v27 = vadd.f32 %v2658_v22, %v1918_v28  ;;  %v1910_v21 = vadd.f32 %v3961_v14, %v1909_v34 }
 0x5b1   : > { %v2355_v19 = vpop.f32.mrf.mxu0 }
 0x5b2   : > { %1964 = vst.msk [vmem:[%s3968_s18 + $0x58] sm:$0xff] %vm586_vm0, %v1948_v27  ;;  %v1946_v38 = vadd.f32 %v2659_v29, %v1910_v21  ;;  %v1931_v4 = vadd.f32 %v2355_v19, %v3961_v14 }
 0x5b3   : > { %v1922_v47 = vpop.f32.mrf.mxu0 }
 0x5b4   : > { %1962 = vst.msk [vmem:[%s3968_s18 + $0x48] sm:$0xff] %vm586_vm0, %v1946_v38  ;;  %v1951_v18 = vadd.f32 %v2660_v44, %v1931_v4  ;;  %v1923_v48 = vadd.f32 %v3961_v14, %v1922_v47 }
 0x5b5   : > { %v2356_v9 = vpop.f32.mrf.mxu0 }
 0x5b6   : > { %1967 = vst.msk [vmem:[%s3968_s18 + $0x70] sm:$0xff] %vm586_vm0, %v1951_v18  ;;  %v1949_v1 = vadd.f32 %v2661_v6, %v1923_v48  ;;  %v1934_v40 = vadd.f32 %v2356_v9, %v3961_v14 }
 0x5b7   : > { %v1925_v43 = vpop.f32.mrf.mxu0 }
 0x5b8   : > { %1965 = vst.msk [vmem:[%s3968_s18 + $0x60] sm:$0xff] %vm586_vm0, %v1949_v1  ;;  %v1952_v35 = vadd.f32 %v2662_v52, %v1934_v40  ;;  %v1926_v41 = vadd.f32 %v3961_v14, %v1925_v43 }
 0x5ba   : > { %1968 = vst.msk [vmem:[%s3968_s18 + $0x78] sm:$0xff] %vm586_vm0, %v1952_v35  ;;  %v1950_v15 = vadd.f32 %v2663_v54, %v1926_v41 }
 0x5bc   : > { %1966 = vst.msk [vmem:[%s3968_s18 + $0x68] sm:$0xff] %vm586_vm0, %v1950_v15 }
 0x5bd   : > { %2861 = shalt.err (!%p2858_p2)
}
 0x5be   : > { %s2862_s24 = scalar_lea.hbm %s4034_s21, 2048  ;;  %s2866_s13 = scalar_lea.hbm %s4153_s8, 8192 }
 0x5bf   : > { %p2863_p4 = scmp.ne.s32.totalorder %s4034_s21, %s2862_s24  ;;  %p2867_p0 = scmp.lt.s32.totalorder %s4034_s21, %s4153_s8 }
 0x5c0   : > { %p2868_p10 = scmp.lt.s32.totalorder %s2866_s13, %s2862_s24 }
 0x5c1   : > { %p2864_p9 = pnand %p2863_p4, %p3187_p8 }
 0x5c2   : > { %p2869_p7 = por %p2868_p10, %p2867_p0 }
 0x5c3   : > { %p2865_p11 = pneg %p2864_p9 }
 0x5c5   : > { %p2870_p6 = pnand %p2869_p7, %p2865_p11 }
 0x5c7   : > { %2873 = shalt.err (!%p2870_p6)
}
 0x5c8   : > { %s2969_s6 = smov 128   ;;  %s2970_s7 = smov 256  }
 0x5c9   : > { %s2971_s16 = smov 8  }
 0x5ca   : > { %2387 = dma.vmem_to_hbm [thread:$0]  (%p3187_p8), %s4029_s12, 2048, %s4034_s21, %s1970_s23, %s2969_s6, %s2970_s7, %s2971_s16  }
 0x5cb PF: > { %s4154_s25 = sld [smem:[#allocation20_spill]]  ;;  %p2429_p1 = scmp.ge.s32.totalorder %s2956_s15, 2 }
 0x5cd   : > { %p2413_p12 = pnand %p2429_p1, %p3194_p3 }
 0x5cf   : > { %p2414_p13 = pneg %p2413_p12 }
 0x5d1   : > { %s2002_s17 = sand.u32 1, %s4154_s25  }
 0x5d2   : > { %s2003_s28 = scalar_lea.sflag [#allocation4], %s2002_s17 }
 0x5d3   : > { %2923 = dma.done.wait (%p2414_p13), %s2003_s28, 2048  }
 0x5d4   : > { %2925 = vsyncadd (%p2414_p13), %s2003_s28, 4294965248  ;;  %s32_s15 = sadd.s32 1, %s2956_s15   ;;  %s4155_s22 = sld [smem:[#allocation23_spill]] }
 0x5d5   : > { %p29_p5 = scmp.ge.s32.totalorder %s32_s15, 6   ;;  %s4156_s12 = sld [smem:[#allocation24_spill]] }
 0x5d6   : > { %s4157_s25 = smov %s2932_s26  ;;  %s4158_s26 = smov %s2936_s27 }
 0x5d7   : > { %s4159_s27 = smov %s3201_s4  ;;  %s4160_s28 = smov %s2948_s30 }
 0x5d8   : > { %s4161_s29 = smov %s2952_s14  ;;  %31 = sbr.rel (!%p29_p5) target bundleno = 19 (0x13), region = 141 }
 0x5da   : > { %s4162_s30 = smov %s4155_s22 }
 0x5db   : > { %s4163_s14 = smov %s4156_s12 }
 0x5dd   :  { %2008 = vsyncpa [#allocation3], 1 }
 0x5de   :  { %2010 = vsyncpa [#allocation3 + $0x1], 1 }
 0x5df   :  { %2011 = vsyncpa [#allocation6], 1 }
 0x5e0   :  { %2012 = vsyncpa [#allocation9], 1 }
 0x5e1   :  { %2013 = vsyncpa [#allocation12], 1 }
 0x5e2   :  { %2014 = vsyncpa [#allocation4], 1 }
 0x5e3   :  { %2016 = vsyncpa [#allocation4 + $0x1], 1 }

</bundles_post_ra>
